<compile_context>
chip_gen: v7x
topology: tpu7x:2x2x1
jax: 0.10.0
libtpu: 0.0.40
codegen_flags: <defaults>
</compile_context>

<pallas_src>
import functools
import numpy as np
import jax
import jax.numpy as jnp
from jax import lax
from jax.experimental import pallas as pl
from jax.experimental.pallas import tpu as pltpu

_ROW_TILE = 256  # row-tile target; small enough for v7x's 64 MiB VMEM


def _row_tile(m):
    return m if m <= _ROW_TILE else _ROW_TILE


# ----------------------------- Pallas kernels -----------------------------


def _proj_kernel(*refs, n_out):
    """One input block, n_out resident weights, n_out outputs (fused QKV)."""
    x_ref = refs[0]
    w_refs = refs[1:1 + n_out]
    o_refs = refs[1 + n_out:]
    x = x_ref[...]
    for w_ref, o_ref in zip(w_refs, o_refs):
        acc = jnp.dot(x, w_ref[...], preferred_element_type=jnp.float32)
        o_ref[...] = acc.astype(o_ref.dtype)


def project(x, *weights):
    """x: (M, K) bf16; weights: (K, Ni) bf16. One launch, len(weights) outputs."""
    M, K = x.shape
    n_out = len(weights)
    tm = _row_tile(M)
    in_specs = [pl.BlockSpec((tm, K), lambda i: (i, 0))]
    in_specs += [pl.BlockSpec(w.shape, lambda i: (0, 0)) for w in weights]
    out_shapes = tuple(jax.ShapeDtypeStruct((M, w.shape[1]), jnp.bfloat16)
                       for w in weights)
    out_specs = tuple(pl.BlockSpec((tm, w.shape[1]), lambda i: (i, 0))
                      for w in weights)
    outs = pl.pallas_call(
        functools.partial(_proj_kernel, n_out=n_out),
        out_shape=out_shapes,
        grid=(pl.cdiv(M, tm),),
        in_specs=in_specs,
        out_specs=out_specs,
        compiler_params=pltpu.CompilerParams(dimension_semantics=("parallel",)),
    )(x, *weights)
    if not isinstance(outs, (tuple, list)):
        outs = (outs,)
    return tuple(outs)


def _attn_kernel(q_ref, k_ref, v_ref, m_ref, o_ref, *,
                 n_head, d_k, d_v, scale, causal):
    """All heads of one batch element. q:(1,Lq,H*dk) k:(1,Lk,H*dk) v:(1,Lk,H*dv)."""
    Lq = q_ref.shape[1]
    Lk = k_ref.shape[1]
    allow = (m_ref[0] != 0)                               # (1, Lk) key-pad mask
    if causal:
        row = lax.broadcasted_iota(jnp.int32, (Lq, Lk), 0)
        col = lax.broadcasted_iota(jnp.int32, (Lq, Lk), 1)
        allow = jnp.logical_and(allow, col <= row)        # (Lq, Lk)

    q_all = q_ref[0]                                      # (Lq, H*dk) bf16
    k_all = k_ref[0]                                      # (Lk, H*dk) bf16
    v_all = v_ref[0]                                      # (Lk, H*dv) bf16
    outs = []
    for h in range(n_head):
        q = q_all[:, h * d_k:(h + 1) * d_k]
        k = k_all[:, h * d_k:(h + 1) * d_k]
        v = v_all[:, h * d_v:(h + 1) * d_v]
        s = lax.dot_general(q, k, (((1,), (1,)), ((), ())),
                            preferred_element_type=jnp.float32) * scale
        s = jnp.where(allow, s, jnp.float32(-1e9))
        s = s - jnp.max(s, axis=-1, keepdims=True)
        p = jnp.exp(s)
        denom = jnp.sum(p, axis=-1, keepdims=True)
        p = p * pl.reciprocal(denom, approx=True)
        o = jnp.dot(p.astype(v.dtype), v, preferred_element_type=jnp.float32)
        outs.append(o.astype(o_ref.dtype))
    o_ref[0] = jnp.concatenate(outs, axis=-1)             # lane-dense store


def attention(q, k, v, key_mask, n_head, d_k, d_v, causal):
    """q:(B,Lq,H*dk) k:(B,Lk,H*dk) v:(B,Lk,H*dv) bf16; key_mask:(B,1,Lk) int32."""
    B, Lq, _ = q.shape
    _, Lk, _ = k.shape
    return pl.pallas_call(
        functools.partial(_attn_kernel, n_head=n_head, d_k=d_k, d_v=d_v,
                          scale=float(d_k) ** -0.5, causal=causal),
        out_shape=jax.ShapeDtypeStruct((B, Lq, n_head * d_v), jnp.bfloat16),
        grid=(B,),
        in_specs=[
            pl.BlockSpec((1, Lq, n_head * d_k), lambda b: (b, 0, 0)),
            pl.BlockSpec((1, Lk, n_head * d_k), lambda b: (b, 0, 0)),
            pl.BlockSpec((1, Lk, n_head * d_v), lambda b: (b, 0, 0)),
            pl.BlockSpec((1, 1, Lk), lambda b: (b, 0, 0)),
        ],
        out_specs=pl.BlockSpec((1, Lq, n_head * d_v), lambda b: (b, 0, 0)),
        compiler_params=pltpu.CompilerParams(dimension_semantics=("parallel",)),
    )(q, k, v, key_mask)


def _linear_add_ln_kernel(x_ref, w_ref, res_ref, g_ref, b_ref, o_ref, *, eps):
    acc = jnp.dot(x_ref[...], w_ref[...], preferred_element_type=jnp.float32)
    x = acc + res_ref[...].astype(jnp.float32)
    mu = jnp.mean(x, axis=-1, keepdims=True)
    var = jnp.mean(jnp.square(x - mu), axis=-1, keepdims=True)
    y = (x - mu) * lax.rsqrt(var + eps)
    o_ref[...] = (y * g_ref[...] + b_ref[...]).astype(o_ref.dtype)


def linear_add_ln(x, w, res, gamma, beta, eps=1e-6):
    """(M,K)@(K,D) + residual(M,D) -> LayerNorm.  Fused epilogue, one launch."""
    M, K = x.shape
    _, D = w.shape
    tm = _row_tile(M)
    return pl.pallas_call(
        functools.partial(_linear_add_ln_kernel, eps=eps),
        out_shape=jax.ShapeDtypeStruct((M, D), jnp.bfloat16),
        grid=(pl.cdiv(M, tm),),
        in_specs=[pl.BlockSpec((tm, K), lambda i: (i, 0)),
                  pl.BlockSpec((K, D), lambda i: (0, 0)),
                  pl.BlockSpec((tm, D), lambda i: (i, 0)),
                  pl.BlockSpec((1, D), lambda i: (0, 0)),
                  pl.BlockSpec((1, D), lambda i: (0, 0))],
        out_specs=pl.BlockSpec((tm, D), lambda i: (i, 0)),
        compiler_params=pltpu.CompilerParams(dimension_semantics=("parallel",)),
    )(x, w, res, gamma, beta)


def _ffn_kernel(x_ref, w1_ref, b1_ref, w2_ref, b2_ref, g_ref, b_ref, o_ref, *, eps):
    x = x_ref[...]                                              # bf16
    h = jnp.dot(x, w1_ref[...], preferred_element_type=jnp.float32) + b1_ref[...]
    h = jnp.maximum(h, 0.0).astype(jnp.bfloat16)
    o = jnp.dot(h, w2_ref[...], preferred_element_type=jnp.float32) + b2_ref[...]
    o = o + x.astype(jnp.float32)                               # residual
    mu = jnp.mean(o, axis=-1, keepdims=True)
    var = jnp.mean(jnp.square(o - mu), axis=-1, keepdims=True)
    y = (o - mu) * lax.rsqrt(var + eps)
    o_ref[...] = (y * g_ref[...] + b_ref[...]).astype(o_ref.dtype)


def ffn(x, w1, b1, w2, b2, gamma, beta, eps=1e-6):
    """Fused w1 + bias + ReLU + w2 + bias + residual + LayerNorm."""
    M, D = x.shape
    d_inner = w1.shape[1]
    tm = _row_tile(M)
    return pl.pallas_call(
        functools.partial(_ffn_kernel, eps=eps),
        out_shape=jax.ShapeDtypeStruct((M, D), jnp.bfloat16),
        grid=(pl.cdiv(M, tm),),
        in_specs=[pl.BlockSpec((tm, D), lambda i: (i, 0)),
                  pl.BlockSpec((D, d_inner), lambda i: (0, 0)),
                  pl.BlockSpec((1, d_inner), lambda i: (0, 0)),
                  pl.BlockSpec((d_inner, D), lambda i: (0, 0)),
                  pl.BlockSpec((1, D), lambda i: (0, 0)),
                  pl.BlockSpec((1, D), lambda i: (0, 0)),
                  pl.BlockSpec((1, D), lambda i: (0, 0))],
        out_specs=pl.BlockSpec((tm, D), lambda i: (i, 0)),
        compiler_params=pltpu.CompilerParams(dimension_semantics=("parallel",)),
    )(x, w1, b1, w2, b2, gamma, beta)


def _ln_kernel(x_ref, g_ref, b_ref, o_ref, *, eps):
    x = x_ref[...].astype(jnp.float32)
    mu = jnp.mean(x, axis=-1, keepdims=True)
    var = jnp.mean(jnp.square(x - mu), axis=-1, keepdims=True)
    y = (x - mu) * lax.rsqrt(var + eps)
    o_ref[...] = (y * g_ref[...] + b_ref[...]).astype(o_ref.dtype)


def layernorm(x, gamma, beta, eps=1e-6):
    M, D = x.shape
    tm = _row_tile(M)
    return pl.pallas_call(
        functools.partial(_ln_kernel, eps=eps),
        out_shape=jax.ShapeDtypeStruct((M, D), jnp.bfloat16),
        grid=(pl.cdiv(M, tm),),
        in_specs=[pl.BlockSpec((tm, D), lambda i: (i, 0)),
                  pl.BlockSpec((1, D), lambda i: (0, 0)),
                  pl.BlockSpec((1, D), lambda i: (0, 0))],
        out_specs=pl.BlockSpec((tm, D), lambda i: (i, 0)),
        compiler_params=pltpu.CompilerParams(dimension_semantics=("parallel",)),
    )(x, gamma, beta)


def _logits_kernel(x_ref, e_ref, o_ref, *, scale):
    acc = lax.dot_general(x_ref[...], e_ref[...], (((1,), (1,)), ((), ())),
                          preferred_element_type=jnp.float32)
    o_ref[...] = (acc * scale).astype(o_ref.dtype)


def shared_emb_logits(x, emb, scale):
    """x:(M,D) bf16, emb:(V,D) bf16 -> (M,V) f32; contracts against emb's last
    dim directly (no E.T materialization) with the scale fused."""
    M, D = x.shape
    V, _ = emb.shape
    tm = _row_tile(M)
    tv = V if V <= 512 else 512
    return pl.pallas_call(
        functools.partial(_logits_kernel, scale=scale),
        out_shape=jax.ShapeDtypeStruct((M, V), jnp.float32),
        grid=(pl.cdiv(M, tm), pl.cdiv(V, tv)),
        in_specs=[pl.BlockSpec((tm, D), lambda i, j: (i, 0)),
                  pl.BlockSpec((tv, D), lambda i, j: (j, 0))],
        out_specs=pl.BlockSpec((tm, tv), lambda i, j: (i, j)),
        compiler_params=pltpu.CompilerParams(
            dimension_semantics=("parallel", "parallel")),
    )(x, emb)


# ----------------------------- model glue -----------------------------


def sinusoid_table(n_position, d_hid):
    pos = np.arange(n_position)[:, None].astype(np.float64)
    hid = np.arange(d_hid)[None, :]
    angle = pos / np.power(10000.0, 2 * (hid // 2) / d_hid)
    table = np.zeros((n_position, d_hid), dtype=np.float64)
    table[:, 0::2] = np.sin(angle[:, 0::2])
    table[:, 1::2] = np.cos(angle[:, 1::2])
    return jnp.asarray(table, jnp.float32)


def multi_head_attention(x_q, x_kv, key_mask, p, n_head, d_k, d_v,
                         causal, self_attn):
    B, Lq, D = x_q.shape
    _, Lk, _ = x_kv.shape
    xq_f = x_q.reshape(B * Lq, D)
    if self_attn:
        q, k, v = project(xq_f, p["wq"], p["wk"], p["wv"])     # one launch
    else:
        (q,) = project(xq_f, p["wq"])
        k, v = project(x_kv.reshape(B * Lk, D), p["wk"], p["wv"])
    q = q.reshape(B, Lq, n_head * d_k)
    k = k.reshape(B, Lk, n_head * d_k)
    v = v.reshape(B, Lk, n_head * d_v)
    o = attention(q, k, v, key_mask, n_head, d_k, d_v, causal)  # (B,Lq,H*dv)
    out = linear_add_ln(o.reshape(B * Lq, n_head * d_v), p["wo"], xq_f,
                        p["ln_g"], p["ln_b"])
    return out.reshape(B, Lq, D)


def positionwise_ffn(x, p):
    B, L, D = x.shape
    out = ffn(x.reshape(B * L, D), p["w1"], p["b1"], p["w2"], p["b2"],
              p["ln_g"], p["ln_b"])
    return out.reshape(B, L, D)


def transformer_forward(params, src_seq, trg_seq, cfg):
    D = cfg["d_model"]
    H, dk, dv = cfg["n_head"], cfg["d_k"], cfg["d_v"]
    B, Ls = src_seq.shape
    _, Lt = trg_seq.shape

    # key-pad masks, same semantics as get_pad_mask; the subsequent mask is
    # generated inside the attention kernel (causal=True) from iota.
    src_kmask = (src_seq != cfg["src_pad_idx"]).astype(jnp.int32)[:, None, :]  # (B,1,Ls)
    trg_kmask = (trg_seq != cfg["trg_pad_idx"]).astype(jnp.int32)[:, None, :]  # (B,1,Lt)

    E = params["emb"]           # (vocab, d_model) f32 — shared emb + output proj
    pos = params["pos_table"]   # (n_position, d_model) f32

    # ----- Encoder -----
    x = E[src_seq] + pos[:Ls][None]
    x = layernorm(x.reshape(B * Ls, D), params["enc_ln_g"],
                  params["enc_ln_b"]).reshape(B, Ls, D)
    for lp in params["enc_layers"]:
        x = multi_head_attention(x, x, src_kmask, lp["slf"], H, dk, dv,
                                 causal=False, self_attn=True)
        x = positionwise_ffn(x, lp["ffn"])
    enc_out = x

    # ----- Decoder -----
    y = E[trg_seq] + pos[:Lt][None]
    y = layernorm(y.reshape(B * Lt, D), params["dec_ln_g"],
                  params["dec_ln_b"]).reshape(B, Lt, D)
    for lp in params["dec_layers"]:
        y = multi_head_attention(y, y, trg_kmask, lp["slf"], H, dk, dv,
                                 causal=True, self_attn=True)
        y = multi_head_attention(y, enc_out, src_kmask, lp["crs"], H, dk, dv,
                                 causal=False, self_attn=False)
        y = positionwise_ffn(y, lp["ffn"])

    # output projection shares the embedding weight; scale_prj = d_model ** -0.5
    logits = shared_emb_logits(y.reshape(B * Lt, D), E.astype(jnp.bfloat16),
                               scale=float(D) ** -0.5)
    return logits  # (B*Lt, n_trg_vocab) f32


# ----------------------------- parameter init -----------------------------


def _xavier(key, shape, dtype=jnp.float32):
    fan_in, fan_out = shape[0], shape[1]
    limit = (6.0 / (fan_in + fan_out)) ** 0.5
    return jax.random.uniform(key, shape, jnp.float32, -limit, limit).astype(dtype)


def init_params(key, cfg):
    D, H, dk, dv = cfg["d_model"], cfg["n_head"], cfg["d_k"], cfg["d_v"]
    d_inner, vocab = cfg["d_inner"], cfg["n_vocab"]
    bf = jnp.bfloat16

    def attn_block(k):
        ks = jax.random.split(k, 4)
        return dict(
            wq=_xavier(ks[0], (D, H * dk), bf), wk=_xavier(ks[1], (D, H * dk), bf),
            wv=_xavier(ks[2], (D, H * dv), bf), wo=_xavier(ks[3], (H * dv, D), bf),
            ln_g=jnp.ones((1, D), jnp.float32), ln_b=jnp.zeros((1, D), jnp.float32))

    def ffn_block(k):
        ks = jax.random.split(k, 2)
        return dict(
            w1=_xavier(ks[0], (D, d_inner), bf), b1=jnp.zeros((1, d_inner), jnp.float32),
            w2=_xavier(ks[1], (d_inner, D), bf), b2=jnp.zeros((1, D), jnp.float32),
            ln_g=jnp.ones((1, D), jnp.float32), ln_b=jnp.zeros((1, D), jnp.float32))

    keys = jax.random.split(key, 1 + 2 * cfg["n_layers"] + 3 * cfg["n_layers"])
    params = dict(
        emb=_xavier(keys[0], (vocab, D)),
        pos_table=sinusoid_table(cfg["n_position"], D),
        enc_ln_g=jnp.ones((1, D), jnp.float32), enc_ln_b=jnp.zeros((1, D), jnp.float32),
        dec_ln_g=jnp.ones((1, D), jnp.float32), dec_ln_b=jnp.zeros((1, D), jnp.float32),
        enc_layers=[], dec_layers=[])
    ki = 1
    for _ in range(cfg["n_layers"]):
        params["enc_layers"].append(dict(slf=attn_block(keys[ki]),
                                         ffn=ffn_block(keys[ki + 1])))
        ki += 2
    for _ in range(cfg["n_layers"]):
        params["dec_layers"].append(dict(slf=attn_block(keys[ki]),
                                         crs=attn_block(keys[ki + 1]),
                                         ffn=ffn_block(keys[ki + 2])))
        ki += 3
    return params


# ----------------------------- main -----------------------------

if __name__ == "__main__":
    cfg = dict(n_vocab=16, src_pad_idx=0, trg_pad_idx=0,
               d_model=32, d_inner=64, n_layers=2, n_head=4, d_k=8, d_v=8,
               n_position=200)

    key = jax.random.PRNGKey(0)
    k_p, k_src, k_trg = jax.random.split(key, 3)
    params = init_params(k_p, cfg)

    B, L = 2, 8
    src_seq = jax.random.randint(k_src, (B, L), 1, cfg["n_vocab"], dtype=jnp.int32)
    trg_seq = jax.random.randint(k_trg, (B, L), 1, cfg["n_vocab"], dtype=jnp.int32)
    # introduce some padding tokens
    src_seq = src_seq.at[:, -2:].set(0)
    trg_seq = trg_seq.at[:, -1:].set(0)

    fwd = jax.jit(lambda p, s, t: transformer_forward(p, s, t, cfg))
    logits = jax.block_until_ready(fwd(params, src_seq, trg_seq))

    assert logits.shape == (B * L, cfg["n_vocab"])
    assert bool(jnp.all(jnp.isfinite(logits)))
    print("KERNEL_OK")
</pallas_src>

<mosaic_0001>
module attributes {stable_mosaic.version = 11 : i64} {
  func.func @_attn_kernel(%arg0: i32, %arg1: memref<1x8x32xbf16, #tpu.memory_space<vmem>>, %arg2: memref<1x8x32xbf16, #tpu.memory_space<vmem>>, %arg3: memref<1x8x32xbf16, #tpu.memory_space<vmem>>, %arg4: memref<1x1x8xi32, #tpu.memory_space<vmem>>, %arg5: memref<1x8x32xbf16, #tpu.memory_space<vmem>>) attributes {dimension_semantics = [#tpu.dimension_semantics<parallel>], iteration_bounds = array<i64: 2>, scalar_prefetch = 0 : i64, scratch_operands = 0 : i64, tpu.core_type = #tpu.core_type<tc>, window_params = [{transform_indices = @transform_0, window_bounds = array<i64: 1, 8, 32>}, {transform_indices = @transform_1, window_bounds = array<i64: 1, 8, 32>}, {transform_indices = @transform_2, window_bounds = array<i64: 1, 8, 32>}, {transform_indices = @transform_3, window_bounds = array<i64: 1, 1, 8>}, {transform_indices = @transform_4, window_bounds = array<i64: 1, 8, 32>}]} {
    %c0 = arith.constant 0 : index
    %c0_0 = arith.constant 0 : index
    %c0_1 = arith.constant 0 : index
    %0 = vector.load %arg4[%c0, %c0_0, %c0_1] : memref<1x1x8xi32, #tpu.memory_space<vmem>>, vector<1x1x8xi32>
    %1 = vector.shape_cast %0 : vector<1x1x8xi32> to vector<1x8xi32>
    %c0_i32 = arith.constant 0 : i32
    %2 = vector.broadcast %c0_i32 : i32 to vector<1x8xi32>
    %3 = arith.cmpi ne, %1, %2 : vector<1x8xi32>
    %c0_2 = arith.constant 0 : index
    %c0_3 = arith.constant 0 : index
    %c0_4 = arith.constant 0 : index
    %4 = vector.load %arg1[%c0_2, %c0_3, %c0_4] : memref<1x8x32xbf16, #tpu.memory_space<vmem>>, vector<1x8x32xbf16>
    %5 = vector.shape_cast %4 : vector<1x8x32xbf16> to vector<8x32xbf16>
    %c0_5 = arith.constant 0 : index
    %c0_6 = arith.constant 0 : index
    %c0_7 = arith.constant 0 : index
    %6 = vector.load %arg2[%c0_5, %c0_6, %c0_7] : memref<1x8x32xbf16, #tpu.memory_space<vmem>>, vector<1x8x32xbf16>
    %7 = vector.shape_cast %6 : vector<1x8x32xbf16> to vector<8x32xbf16>
    %c0_8 = arith.constant 0 : index
    %c0_9 = arith.constant 0 : index
    %c0_10 = arith.constant 0 : index
    %8 = vector.load %arg3[%c0_8, %c0_9, %c0_10] : memref<1x8x32xbf16, #tpu.memory_space<vmem>>, vector<1x8x32xbf16>
    %9 = vector.shape_cast %8 : vector<1x8x32xbf16> to vector<8x32xbf16>
    %10 = vector.extract_strided_slice %5 {offsets = [0, 0], sizes = [8, 8], strides = [1, 1]} : vector<8x32xbf16> to vector<8x8xbf16>
    %11 = vector.extract_strided_slice %7 {offsets = [0, 0], sizes = [8, 8], strides = [1, 1]} : vector<8x32xbf16> to vector<8x8xbf16>
    %12 = vector.extract_strided_slice %9 {offsets = [0, 0], sizes = [8, 8], strides = [1, 1]} : vector<8x32xbf16> to vector<8x8xbf16>
    %cst = arith.constant dense<0.000000e+00> : vector<8x8xf32>
    %13 = tpu.matmul %10, %11, %cst {dimension_numbers = #tpu.dot_dimension_numbers<[1], [1], [0], [0], [0, 0, 1, 0], [], []>} : vector<8x8xbf16>, vector<8x8xbf16>, vector<8x8xf32> -> vector<8x8xf32>
    %cst_11 = arith.constant 0.353553385 : f32
    %14 = vector.broadcast %cst_11 : f32 to vector<8x8xf32>
    %15 = arith.mulf %13, %14 : vector<8x8xf32>
    %cst_12 = arith.constant -1.000000e+09 : f32
    %16 = vector.shape_cast %3 : vector<1x8xi1> to vector<1x8xi1>
    %17 = vector.broadcast %16 : vector<1x8xi1> to vector<8x8xi1>
    %18 = vector.broadcast %cst_12 : f32 to vector<8x8xf32>
    %19 = arith.select %17, %15, %18 : vector<8x8xi1>, vector<8x8xf32>
    %cst_13 = arith.constant dense<0xFF800000> : vector<8xf32>
    %20 = vector.multi_reduction <maximumf>, %19, %cst_13 [1] : vector<8x8xf32> to vector<8xf32>
    %21 = vector.shape_cast %20 : vector<8xf32> to vector<8x1xf32>
    %22 = vector.broadcast %21 : vector<8x1xf32> to vector<8x8xf32>
    %23 = arith.subf %19, %22 : vector<8x8xf32>
    %24 = math.exp %23 : vector<8x8xf32>
    %cst_14 = arith.constant dense<0.000000e+00> : vector<8xf32>
    %25 = vector.multi_reduction <add>, %24, %cst_14 [1] : vector<8x8xf32> to vector<8xf32>
    %26 = vector.shape_cast %25 : vector<8xf32> to vector<8x1xf32>
    %27 = tpu.reciprocal %26 {approx = true} : vector<8x1xf32> -> vector<8x1xf32>
    %28 = vector.broadcast %27 : vector<8x1xf32> to vector<8x8xf32>
    %29 = arith.mulf %24, %28 : vector<8x8xf32>
    %30 = arith.truncf %29 : vector<8x8xf32> to vector<8x8xbf16>
    %cst_15 = arith.constant dense<0.000000e+00> : vector<8x8xf32>
    %31 = tpu.matmul %30, %12, %cst_15 {dimension_numbers = #tpu.dot_dimension_numbers<[1], [0], [0], [1], [0, 0, 1, 1], [], []>} : vector<8x8xbf16>, vector<8x8xbf16>, vector<8x8xf32> -> vector<8x8xf32>
    %32 = arith.truncf %31 : vector<8x8xf32> to vector<8x8xbf16>
    %33 = vector.extract_strided_slice %5 {offsets = [0, 8], sizes = [8, 8], strides = [1, 1]} : vector<8x32xbf16> to vector<8x8xbf16>
    %34 = vector.extract_strided_slice %7 {offsets = [0, 8], sizes = [8, 8], strides = [1, 1]} : vector<8x32xbf16> to vector<8x8xbf16>
    %35 = vector.extract_strided_slice %9 {offsets = [0, 8], sizes = [8, 8], strides = [1, 1]} : vector<8x32xbf16> to vector<8x8xbf16>
    %cst_16 = arith.constant dense<0.000000e+00> : vector<8x8xf32>
    %36 = tpu.matmul %33, %34, %cst_16 {dimension_numbers = #tpu.dot_dimension_numbers<[1], [1], [0], [0], [0, 0, 1, 0], [], []>} : vector<8x8xbf16>, vector<8x8xbf16>, vector<8x8xf32> -> vector<8x8xf32>
    %cst_17 = arith.constant 0.353553385 : f32
    %37 = vector.broadcast %cst_17 : f32 to vector<8x8xf32>
    %38 = arith.mulf %36, %37 : vector<8x8xf32>
    %cst_18 = arith.constant -1.000000e+09 : f32
    %39 = vector.shape_cast %3 : vector<1x8xi1> to vector<1x8xi1>
    %40 = vector.broadcast %39 : vector<1x8xi1> to vector<8x8xi1>
    %41 = vector.broadcast %cst_18 : f32 to vector<8x8xf32>
    %42 = arith.select %40, %38, %41 : vector<8x8xi1>, vector<8x8xf32>
    %cst_19 = arith.constant dense<0xFF800000> : vector<8xf32>
    %43 = vector.multi_reduction <maximumf>, %42, %cst_19 [1] : vector<8x8xf32> to vector<8xf32>
    %44 = vector.shape_cast %43 : vector<8xf32> to vector<8x1xf32>
    %45 = vector.broadcast %44 : vector<8x1xf32> to vector<8x8xf32>
    %46 = arith.subf %42, %45 : vector<8x8xf32>
    %47 = math.exp %46 : vector<8x8xf32>
    %cst_20 = arith.constant dense<0.000000e+00> : vector<8xf32>
    %48 = vector.multi_reduction <add>, %47, %cst_20 [1] : vector<8x8xf32> to vector<8xf32>
    %49 = vector.shape_cast %48 : vector<8xf32> to vector<8x1xf32>
    %50 = tpu.reciprocal %49 {approx = true} : vector<8x1xf32> -> vector<8x1xf32>
    %51 = vector.broadcast %50 : vector<8x1xf32> to vector<8x8xf32>
    %52 = arith.mulf %47, %51 : vector<8x8xf32>
    %53 = arith.truncf %52 : vector<8x8xf32> to vector<8x8xbf16>
    %cst_21 = arith.constant dense<0.000000e+00> : vector<8x8xf32>
    %54 = tpu.matmul %53, %35, %cst_21 {dimension_numbers = #tpu.dot_dimension_numbers<[1], [0], [0], [1], [0, 0, 1, 1], [], []>} : vector<8x8xbf16>, vector<8x8xbf16>, vector<8x8xf32> -> vector<8x8xf32>
    %55 = arith.truncf %54 : vector<8x8xf32> to vector<8x8xbf16>
    %56 = vector.extract_strided_slice %5 {offsets = [0, 16], sizes = [8, 8], strides = [1, 1]} : vector<8x32xbf16> to vector<8x8xbf16>
    %57 = vector.extract_strided_slice %7 {offsets = [0, 16], sizes = [8, 8], strides = [1, 1]} : vector<8x32xbf16> to vector<8x8xbf16>
    %58 = vector.extract_strided_slice %9 {offsets = [0, 16], sizes = [8, 8], strides = [1, 1]} : vector<8x32xbf16> to vector<8x8xbf16>
    %cst_22 = arith.constant dense<0.000000e+00> : vector<8x8xf32>
    %59 = tpu.matmul %56, %57, %cst_22 {dimension_numbers = #tpu.dot_dimension_numbers<[1], [1], [0], [0], [0, 0, 1, 0], [], []>} : vector<8x8xbf16>, vector<8x8xbf16>, vector<8x8xf32> -> vector<8x8xf32>
    %cst_23 = arith.constant 0.353553385 : f32
    %60 = vector.broadcast %cst_23 : f32 to vector<8x8xf32>
    %61 = arith.mulf %59, %60 : vector<8x8xf32>
    %cst_24 = arith.constant -1.000000e+09 : f32
    %62 = vector.shape_cast %3 : vector<1x8xi1> to vector<1x8xi1>
    %63 = vector.broadcast %62 : vector<1x8xi1> to vector<8x8xi1>
    %64 = vector.broadcast %cst_24 : f32 to vector<8x8xf32>
    %65 = arith.select %63, %61, %64 : vector<8x8xi1>, vector<8x8xf32>
    %cst_25 = arith.constant dense<0xFF800000> : vector<8xf32>
    %66 = vector.multi_reduction <maximumf>, %65, %cst_25 [1] : vector<8x8xf32> to vector<8xf32>
    %67 = vector.shape_cast %66 : vector<8xf32> to vector<8x1xf32>
    %68 = vector.broadcast %67 : vector<8x1xf32> to vector<8x8xf32>
    %69 = arith.subf %65, %68 : vector<8x8xf32>
    %70 = math.exp %69 : vector<8x8xf32>
    %cst_26 = arith.constant dense<0.000000e+00> : vector<8xf32>
    %71 = vector.multi_reduction <add>, %70, %cst_26 [1] : vector<8x8xf32> to vector<8xf32>
    %72 = vector.shape_cast %71 : vector<8xf32> to vector<8x1xf32>
    %73 = tpu.reciprocal %72 {approx = true} : vector<8x1xf32> -> vector<8x1xf32>
    %74 = vector.broadcast %73 : vector<8x1xf32> to vector<8x8xf32>
    %75 = arith.mulf %70, %74 : vector<8x8xf32>
    %76 = arith.truncf %75 : vector<8x8xf32> to vector<8x8xbf16>
    %cst_27 = arith.constant dense<0.000000e+00> : vector<8x8xf32>
    %77 = tpu.matmul %76, %58, %cst_27 {dimension_numbers = #tpu.dot_dimension_numbers<[1], [0], [0], [1], [0, 0, 1, 1], [], []>} : vector<8x8xbf16>, vector<8x8xbf16>, vector<8x8xf32> -> vector<8x8xf32>
    %78 = arith.truncf %77 : vector<8x8xf32> to vector<8x8xbf16>
    %79 = vector.extract_strided_slice %5 {offsets = [0, 24], sizes = [8, 8], strides = [1, 1]} : vector<8x32xbf16> to vector<8x8xbf16>
    %80 = vector.extract_strided_slice %7 {offsets = [0, 24], sizes = [8, 8], strides = [1, 1]} : vector<8x32xbf16> to vector<8x8xbf16>
    %81 = vector.extract_strided_slice %9 {offsets = [0, 24], sizes = [8, 8], strides = [1, 1]} : vector<8x32xbf16> to vector<8x8xbf16>
    %cst_28 = arith.constant dense<0.000000e+00> : vector<8x8xf32>
    %82 = tpu.matmul %79, %80, %cst_28 {dimension_numbers = #tpu.dot_dimension_numbers<[1], [1], [0], [0], [0, 0, 1, 0], [], []>} : vector<8x8xbf16>, vector<8x8xbf16>, vector<8x8xf32> -> vector<8x8xf32>
    %cst_29 = arith.constant 0.353553385 : f32
    %83 = vector.broadcast %cst_29 : f32 to vector<8x8xf32>
    %84 = arith.mulf %82, %83 : vector<8x8xf32>
    %cst_30 = arith.constant -1.000000e+09 : f32
    %85 = vector.shape_cast %3 : vector<1x8xi1> to vector<1x8xi1>
    %86 = vector.broadcast %85 : vector<1x8xi1> to vector<8x8xi1>
    %87 = vector.broadcast %cst_30 : f32 to vector<8x8xf32>
    %88 = arith.select %86, %84, %87 : vector<8x8xi1>, vector<8x8xf32>
    %cst_31 = arith.constant dense<0xFF800000> : vector<8xf32>
    %89 = vector.multi_reduction <maximumf>, %88, %cst_31 [1] : vector<8x8xf32> to vector<8xf32>
    %90 = vector.shape_cast %89 : vector<8xf32> to vector<8x1xf32>
    %91 = vector.broadcast %90 : vector<8x1xf32> to vector<8x8xf32>
    %92 = arith.subf %88, %91 : vector<8x8xf32>
    %93 = math.exp %92 : vector<8x8xf32>
    %cst_32 = arith.constant dense<0.000000e+00> : vector<8xf32>
    %94 = vector.multi_reduction <add>, %93, %cst_32 [1] : vector<8x8xf32> to vector<8xf32>
    %95 = vector.shape_cast %94 : vector<8xf32> to vector<8x1xf32>
    %96 = tpu.reciprocal %95 {approx = true} : vector<8x1xf32> -> vector<8x1xf32>
    %97 = vector.broadcast %96 : vector<8x1xf32> to vector<8x8xf32>
    %98 = arith.mulf %93, %97 : vector<8x8xf32>
    %99 = arith.truncf %98 : vector<8x8xf32> to vector<8x8xbf16>
    %cst_33 = arith.constant dense<0.000000e+00> : vector<8x8xf32>
    %100 = tpu.matmul %99, %81, %cst_33 {dimension_numbers = #tpu.dot_dimension_numbers<[1], [0], [0], [1], [0, 0, 1, 1], [], []>} : vector<8x8xbf16>, vector<8x8xbf16>, vector<8x8xf32> -> vector<8x8xf32>
    %101 = arith.truncf %100 : vector<8x8xf32> to vector<8x8xbf16>
    %102 = tpu.concatenate %32, %55, %78, %101 in 1 : vector<8x8xbf16>, vector<8x8xbf16>, vector<8x8xbf16>, vector<8x8xbf16> -> vector<8x32xbf16>
    %c0_34 = arith.constant 0 : index
    %c0_35 = arith.constant 0 : index
    %c0_36 = arith.constant 0 : index
    %103 = vector.load %arg5[%c0_34, %c0_35, %c0_36] : memref<1x8x32xbf16, #tpu.memory_space<vmem>>, vector<1x8x32xbf16>
    %104 = vector.shape_cast %103 : vector<1x8x32xbf16> to vector<8x32xbf16>
    %105 = vector.shape_cast %102 : vector<8x32xbf16> to vector<1x8x32xbf16>
    tpu.vector_store %arg5[%c0_34, %c0_35, %c0_36], %105 {strides = array<i32>} : memref<1x8x32xbf16, #tpu.memory_space<vmem>>, vector<1x8x32xbf16>,
    return
  }
  func.func @transform_0(%arg0: i32) -> (i32, i32, i32) {
    %c0_i32 = arith.constant 0 : i32
    %c0_i32_0 = arith.constant 0 : i32
    %c0_i32_1 = arith.constant 0 : i32
    return %arg0, %c0_i32, %c0_i32_0 : i32, i32, i32
  }
  func.func @transform_1(%arg0: i32) -> (i32, i32, i32) {
    %c0_i32 = arith.constant 0 : i32
    %c0_i32_0 = arith.constant 0 : i32
    %c0_i32_1 = arith.constant 0 : i32
    return %arg0, %c0_i32, %c0_i32_0 : i32, i32, i32
  }
  func.func @transform_2(%arg0: i32) -> (i32, i32, i32) {
    %c0_i32 = arith.constant 0 : i32
    %c0_i32_0 = arith.constant 0 : i32
    %c0_i32_1 = arith.constant 0 : i32
    return %arg0, %c0_i32, %c0_i32_0 : i32, i32, i32
  }
  func.func @transform_3(%arg0: i32) -> (i32, i32, i32) {
    %c0_i32 = arith.constant 0 : i32
    %c0_i32_0 = arith.constant 0 : i32
    %c0_i32_1 = arith.constant 0 : i32
    return %arg0, %c0_i32, %c0_i32_0 : i32, i32, i32
  }
  func.func @transform_4(%arg0: i32) -> (i32, i32, i32) {
    %c0_i32 = arith.constant 0 : i32
    %c0_i32_0 = arith.constant 0 : i32
    %c0_i32_1 = arith.constant 0 : i32
    return %arg0, %c0_i32, %c0_i32_0 : i32, i32, i32
  }
}

module attributes {stable_mosaic.version = 11 : i64} {
  func.func @_ln_kernel(%arg0: i32, %arg1: memref<16x32xf32, #tpu.memory_space<vmem>>, %arg2: memref<1x32xf32, #tpu.memory_space<vmem>>, %arg3: memref<1x32xf32, #tpu.memory_space<vmem>>, %arg4: memref<16x32xbf16, #tpu.memory_space<vmem>>) attributes {dimension_semantics = [#tpu.dimension_semantics<parallel>], iteration_bounds = array<i64: 1>, scalar_prefetch = 0 : i64, scratch_operands = 0 : i64, tpu.core_type = #tpu.core_type<tc>, window_params = [{transform_indices = @transform_0, window_bounds = array<i64: 16, 32>}, {pipeline_mode = #tpu.pipeline_mode<synchronous>, transform_indices = @transform_1, window_bounds = array<i64: 1, 32>}, {pipeline_mode = #tpu.pipeline_mode<synchronous>, transform_indices = @transform_2, window_bounds = array<i64: 1, 32>}, {transform_indices = @transform_3, window_bounds = array<i64: 16, 32>}]} {
    %c0 = arith.constant 0 : index
    %c0_0 = arith.constant 0 : index
    %0 = vector.load %arg1[%c0, %c0_0] : memref<16x32xf32, #tpu.memory_space<vmem>>, vector<16x32xf32>
    %cst = arith.constant dense<0.000000e+00> : vector<16xf32>
    %1 = vector.multi_reduction <add>, %0, %cst [1] : vector<16x32xf32> to vector<16xf32>
    %2 = vector.shape_cast %1 : vector<16xf32> to vector<16x1xf32>
    %cst_1 = arith.constant 3.200000e+01 : f32
    %3 = vector.broadcast %cst_1 : f32 to vector<16x1xf32>
    %4 = arith.divf %2, %3 : vector<16x1xf32>
    %5 = vector.broadcast %4 : vector<16x1xf32> to vector<16x32xf32>
    %6 = arith.subf %0, %5 : vector<16x32xf32>
    %7 = arith.mulf %6, %6 : vector<16x32xf32>
    %cst_2 = arith.constant dense<0.000000e+00> : vector<16xf32>
    %8 = vector.multi_reduction <add>, %7, %cst_2 [1] : vector<16x32xf32> to vector<16xf32>
    %9 = vector.shape_cast %8 : vector<16xf32> to vector<16x1xf32>
    %cst_3 = arith.constant 3.200000e+01 : f32
    %10 = vector.broadcast %cst_3 : f32 to vector<16x1xf32>
    %11 = arith.divf %9, %10 : vector<16x1xf32>
    %12 = vector.broadcast %4 : vector<16x1xf32> to vector<16x32xf32>
    %13 = arith.subf %0, %12 : vector<16x32xf32>
    %cst_4 = arith.constant 9.99999997E-7 : f32
    %14 = vector.broadcast %cst_4 : f32 to vector<16x1xf32>
    %15 = arith.addf %11, %14 : vector<16x1xf32>
    %16 = math.rsqrt %15 : vector<16x1xf32>
    %17 = vector.broadcast %16 : vector<16x1xf32> to vector<16x32xf32>
    %18 = arith.mulf %13, %17 : vector<16x32xf32>
    %c0_5 = arith.constant 0 : index
    %c0_6 = arith.constant 0 : index
    %19 = vector.load %arg2[%c0_5, %c0_6] : memref<1x32xf32, #tpu.memory_space<vmem>>, vector<1x32xf32>
    %20 = vector.broadcast %19 : vector<1x32xf32> to vector<16x32xf32>
    %21 = arith.mulf %18, %20 : vector<16x32xf32>
    %c0_7 = arith.constant 0 : index
    %c0_8 = arith.constant 0 : index
    %22 = vector.load %arg3[%c0_7, %c0_8] : memref<1x32xf32, #tpu.memory_space<vmem>>, vector<1x32xf32>
    %23 = vector.broadcast %22 : vector<1x32xf32> to vector<16x32xf32>
    %24 = arith.addf %21, %23 : vector<16x32xf32>
    %25 = arith.truncf %24 : vector<16x32xf32> to vector<16x32xbf16>
    %c0_9 = arith.constant 0 : index
    %c0_10 = arith.constant 0 : index
    %26 = vector.load %arg4[%c0_9, %c0_10] : memref<16x32xbf16, #tpu.memory_space<vmem>>, vector<16x32xbf16>
    tpu.vector_store %arg4[%c0_9, %c0_10], %25 {strides = array<i32>} : memref<16x32xbf16, #tpu.memory_space<vmem>>, vector<16x32xbf16>,
    return
  }
  func.func @transform_0(%arg0: i32) -> (i32, i32) {
    %c0_i32 = arith.constant 0 : i32
    %c0_i32_0 = arith.constant 0 : i32
    return %arg0, %c0_i32 : i32, i32
  }
  func.func @transform_1(%arg0: i32) -> (i32, i32) {
    %c0_i32 = arith.constant 0 : i32
    %c0_i32_0 = arith.constant 0 : i32
    %c0_i32_1 = arith.constant 0 : i32
    return %c0_i32, %c0_i32_0 : i32, i32
  }
  func.func @transform_2(%arg0: i32) -> (i32, i32) {
    %c0_i32 = arith.constant 0 : i32
    %c0_i32_0 = arith.constant 0 : i32
    %c0_i32_1 = arith.constant 0 : i32
    return %c0_i32, %c0_i32_0 : i32, i32
  }
  func.func @transform_3(%arg0: i32) -> (i32, i32) {
    %c0_i32 = arith.constant 0 : i32
    %c0_i32_0 = arith.constant 0 : i32
    return %arg0, %c0_i32 : i32, i32
  }
}

module attributes {stable_mosaic.version = 11 : i64} {
  func.func @_proj_kernel(%arg0: i32, %arg1: memref<16x32xbf16, #tpu.memory_space<vmem>>, %arg2: memref<32x32xbf16, #tpu.memory_space<vmem>>, %arg3: memref<32x32xbf16, #tpu.memory_space<vmem>>, %arg4: memref<32x32xbf16, #tpu.memory_space<vmem>>, %arg5: memref<16x32xbf16, #tpu.memory_space<vmem>>, %arg6: memref<16x32xbf16, #tpu.memory_space<vmem>>, %arg7: memref<16x32xbf16, #tpu.memory_space<vmem>>) attributes {dimension_semantics = [#tpu.dimension_semantics<parallel>], iteration_bounds = array<i64: 1>, scalar_prefetch = 0 : i64, scratch_operands = 0 : i64, tpu.core_type = #tpu.core_type<tc>, window_params = [{transform_indices = @transform_0, window_bounds = array<i64: 16, 32>}, {pipeline_mode = #tpu.pipeline_mode<synchronous>, transform_indices = @transform_1, window_bounds = array<i64: 32, 32>}, {pipeline_mode = #tpu.pipeline_mode<synchronous>, transform_indices = @transform_2, window_bounds = array<i64: 32, 32>}, {pipeline_mode = #tpu.pipeline_mode<synchronous>, transform_indices = @transform_3, window_bounds = array<i64: 32, 32>}, {transform_indices = @transform_4, window_bounds = array<i64: 16, 32>}, {transform_indices = @transform_5, window_bounds = array<i64: 16, 32>}, {transform_indices = @transform_6, window_bounds = array<i64: 16, 32>}]} {
    %c0 = arith.constant 0 : index
    %c0_0 = arith.constant 0 : index
    %0 = vector.load %arg1[%c0, %c0_0] : memref<16x32xbf16, #tpu.memory_space<vmem>>, vector<16x32xbf16>
    %c0_1 = arith.constant 0 : index
    %c0_2 = arith.constant 0 : index
    %1 = vector.load %arg2[%c0_1, %c0_2] : memref<32x32xbf16, #tpu.memory_space<vmem>>, vector<32x32xbf16>
    %cst = arith.constant dense<0.000000e+00> : vector<16x32xf32>
    %2 = tpu.matmul %0, %1, %cst {dimension_numbers = #tpu.dot_dimension_numbers<[1], [0], [0], [1], [0, 0, 1, 1], [], []>} : vector<16x32xbf16>, vector<32x32xbf16>, vector<16x32xf32> -> vector<16x32xf32>
    %3 = arith.truncf %2 : vector<16x32xf32> to vector<16x32xbf16>
    %c0_3 = arith.constant 0 : index
    %c0_4 = arith.constant 0 : index
    %4 = vector.load %arg5[%c0_3, %c0_4] : memref<16x32xbf16, #tpu.memory_space<vmem>>, vector<16x32xbf16>
    tpu.vector_store %arg5[%c0_3, %c0_4], %3 {strides = array<i32>} : memref<16x32xbf16, #tpu.memory_space<vmem>>, vector<16x32xbf16>,
    %c0_5 = arith.constant 0 : index
    %c0_6 = arith.constant 0 : index
    %5 = vector.load %arg3[%c0_5, %c0_6] : memref<32x32xbf16, #tpu.memory_space<vmem>>, vector<32x32xbf16>
    %cst_7 = arith.constant dense<0.000000e+00> : vector<16x32xf32>
    %6 = tpu.matmul %0, %5, %cst_7 {dimension_numbers = #tpu.dot_dimension_numbers<[1], [0], [0], [1], [0, 0, 1, 1], [], []>} : vector<16x32xbf16>, vector<32x32xbf16>, vector<16x32xf32> -> vector<16x32xf32>
    %7 = arith.truncf %6 : vector<16x32xf32> to vector<16x32xbf16>
    %c0_8 = arith.constant 0 : index
    %c0_9 = arith.constant 0 : index
    %8 = vector.load %arg6[%c0_8, %c0_9] : memref<16x32xbf16, #tpu.memory_space<vmem>>, vector<16x32xbf16>
    tpu.vector_store %arg6[%c0_8, %c0_9], %7 {strides = array<i32>} : memref<16x32xbf16, #tpu.memory_space<vmem>>, vector<16x32xbf16>,
    %c0_10 = arith.constant 0 : index
    %c0_11 = arith.constant 0 : index
    %9 = vector.load %arg4[%c0_10, %c0_11] : memref<32x32xbf16, #tpu.memory_space<vmem>>, vector<32x32xbf16>
    %cst_12 = arith.constant dense<0.000000e+00> : vector<16x32xf32>
    %10 = tpu.matmul %0, %9, %cst_12 {dimension_numbers = #tpu.dot_dimension_numbers<[1], [0], [0], [1], [0, 0, 1, 1], [], []>} : vector<16x32xbf16>, vector<32x32xbf16>, vector<16x32xf32> -> vector<16x32xf32>
    %11 = arith.truncf %10 : vector<16x32xf32> to vector<16x32xbf16>
    %c0_13 = arith.constant 0 : index
    %c0_14 = arith.constant 0 : index
    %12 = vector.load %arg7[%c0_13, %c0_14] : memref<16x32xbf16, #tpu.memory_space<vmem>>, vector<16x32xbf16>
    tpu.vector_store %arg7[%c0_13, %c0_14], %11 {strides = array<i32>} : memref<16x32xbf16, #tpu.memory_space<vmem>>, vector<16x32xbf16>,
    return
  }
  func.func @transform_0(%arg0: i32) -> (i32, i32) {
    %c0_i32 = arith.constant 0 : i32
    %c0_i32_0 = arith.constant 0 : i32
    return %arg0, %c0_i32 : i32, i32
  }
  func.func @transform_1(%arg0: i32) -> (i32, i32) {
    %c0_i32 = arith.constant 0 : i32
    %c0_i32_0 = arith.constant 0 : i32
    %c0_i32_1 = arith.constant 0 : i32
    return %c0_i32, %c0_i32_0 : i32, i32
  }
  func.func @transform_2(%arg0: i32) -> (i32, i32) {
    %c0_i32 = arith.constant 0 : i32
    %c0_i32_0 = arith.constant 0 : i32
    %c0_i32_1 = arith.constant 0 : i32
    return %c0_i32, %c0_i32_0 : i32, i32
  }
  func.func @transform_3(%arg0: i32) -> (i32, i32) {
    %c0_i32 = arith.constant 0 : i32
    %c0_i32_0 = arith.constant 0 : i32
    %c0_i32_1 = arith.constant 0 : i32
    return %c0_i32, %c0_i32_0 : i32, i32
  }
  func.func @transform_4(%arg0: i32) -> (i32, i32) {
    %c0_i32 = arith.constant 0 : i32
    %c0_i32_0 = arith.constant 0 : i32
    return %arg0, %c0_i32 : i32, i32
  }
  func.func @transform_5(%arg0: i32) -> (i32, i32) {
    %c0_i32 = arith.constant 0 : i32
    %c0_i32_0 = arith.constant 0 : i32
    return %arg0, %c0_i32 : i32, i32
  }
  func.func @transform_6(%arg0: i32) -> (i32, i32) {
    %c0_i32 = arith.constant 0 : i32
    %c0_i32_0 = arith.constant 0 : i32
    return %arg0, %c0_i32 : i32, i32
  }
}

module attributes {stable_mosaic.version = 11 : i64} {
  func.func @_linear_add_ln_kernel(%arg0: i32, %arg1: memref<16x32xbf16, #tpu.memory_space<vmem>>, %arg2: memref<32x32xbf16, #tpu.memory_space<vmem>>, %arg3: memref<16x32xbf16, #tpu.memory_space<vmem>>, %arg4: memref<1x32xf32, #tpu.memory_space<vmem>>, %arg5: memref<1x32xf32, #tpu.memory_space<vmem>>, %arg6: memref<16x32xbf16, #tpu.memory_space<vmem>>) attributes {dimension_semantics = [#tpu.dimension_semantics<parallel>], iteration_bounds = array<i64: 1>, scalar_prefetch = 0 : i64, scratch_operands = 0 : i64, tpu.core_type = #tpu.core_type<tc>, window_params = [{transform_indices = @transform_0, window_bounds = array<i64: 16, 32>}, {pipeline_mode = #tpu.pipeline_mode<synchronous>, transform_indices = @transform_1, window_bounds = array<i64: 32, 32>}, {transform_indices = @transform_2, window_bounds = array<i64: 16, 32>}, {pipeline_mode = #tpu.pipeline_mode<synchronous>, transform_indices = @transform_3, window_bounds = array<i64: 1, 32>}, {pipeline_mode = #tpu.pipeline_mode<synchronous>, transform_indices = @transform_4, window_bounds = array<i64: 1, 32>}, {transform_indices = @transform_5, window_bounds = array<i64: 16, 32>}]} {
    %c0 = arith.constant 0 : index
    %c0_0 = arith.constant 0 : index
    %0 = vector.load %arg1[%c0, %c0_0] : memref<16x32xbf16, #tpu.memory_space<vmem>>, vector<16x32xbf16>
    %c0_1 = arith.constant 0 : index
    %c0_2 = arith.constant 0 : index
    %1 = vector.load %arg2[%c0_1, %c0_2] : memref<32x32xbf16, #tpu.memory_space<vmem>>, vector<32x32xbf16>
    %cst = arith.constant dense<0.000000e+00> : vector<16x32xf32>
    %2 = tpu.matmul %0, %1, %cst {dimension_numbers = #tpu.dot_dimension_numbers<[1], [0], [0], [1], [0, 0, 1, 1], [], []>} : vector<16x32xbf16>, vector<32x32xbf16>, vector<16x32xf32> -> vector<16x32xf32>
    %c0_3 = arith.constant 0 : index
    %c0_4 = arith.constant 0 : index
    %3 = vector.load %arg3[%c0_3, %c0_4] : memref<16x32xbf16, #tpu.memory_space<vmem>>, vector<16x32xbf16>
    %4 = arith.extf %3 : vector<16x32xbf16> to vector<16x32xf32>
    %5 = arith.addf %2, %4 : vector<16x32xf32>
    %cst_5 = arith.constant dense<0.000000e+00> : vector<16xf32>
    %6 = vector.multi_reduction <add>, %5, %cst_5 [1] : vector<16x32xf32> to vector<16xf32>
    %7 = vector.shape_cast %6 : vector<16xf32> to vector<16x1xf32>
    %cst_6 = arith.constant 3.200000e+01 : f32
    %8 = vector.broadcast %cst_6 : f32 to vector<16x1xf32>
    %9 = arith.divf %7, %8 : vector<16x1xf32>
    %10 = vector.broadcast %9 : vector<16x1xf32> to vector<16x32xf32>
    %11 = arith.subf %5, %10 : vector<16x32xf32>
    %12 = arith.mulf %11, %11 : vector<16x32xf32>
    %cst_7 = arith.constant dense<0.000000e+00> : vector<16xf32>
    %13 = vector.multi_reduction <add>, %12, %cst_7 [1] : vector<16x32xf32> to vector<16xf32>
    %14 = vector.shape_cast %13 : vector<16xf32> to vector<16x1xf32>
    %cst_8 = arith.constant 3.200000e+01 : f32
    %15 = vector.broadcast %cst_8 : f32 to vector<16x1xf32>
    %16 = arith.divf %14, %15 : vector<16x1xf32>
    %17 = vector.broadcast %9 : vector<16x1xf32> to vector<16x32xf32>
    %18 = arith.subf %5, %17 : vector<16x32xf32>
    %cst_9 = arith.constant 9.99999997E-7 : f32
    %19 = vector.broadcast %cst_9 : f32 to vector<16x1xf32>
    %20 = arith.addf %16, %19 : vector<16x1xf32>
    %21 = math.rsqrt %20 : vector<16x1xf32>
    %22 = vector.broadcast %21 : vector<16x1xf32> to vector<16x32xf32>
    %23 = arith.mulf %18, %22 : vector<16x32xf32>
    %c0_10 = arith.constant 0 : index
    %c0_11 = arith.constant 0 : index
    %24 = vector.load %arg4[%c0_10, %c0_11] : memref<1x32xf32, #tpu.memory_space<vmem>>, vector<1x32xf32>
    %25 = vector.broadcast %24 : vector<1x32xf32> to vector<16x32xf32>
    %26 = arith.mulf %23, %25 : vector<16x32xf32>
    %c0_12 = arith.constant 0 : index
    %c0_13 = arith.constant 0 : index
    %27 = vector.load %arg5[%c0_12, %c0_13] : memref<1x32xf32, #tpu.memory_space<vmem>>, vector<1x32xf32>
    %28 = vector.broadcast %27 : vector<1x32xf32> to vector<16x32xf32>
    %29 = arith.addf %26, %28 : vector<16x32xf32>
    %30 = arith.truncf %29 : vector<16x32xf32> to vector<16x32xbf16>
    %c0_14 = arith.constant 0 : index
    %c0_15 = arith.constant 0 : index
    %31 = vector.load %arg6[%c0_14, %c0_15] : memref<16x32xbf16, #tpu.memory_space<vmem>>, vector<16x32xbf16>
    tpu.vector_store %arg6[%c0_14, %c0_15], %30 {strides = array<i32>} : memref<16x32xbf16, #tpu.memory_space<vmem>>, vector<16x32xbf16>,
    return
  }
  func.func @transform_0(%arg0: i32) -> (i32, i32) {
    %c0_i32 = arith.constant 0 : i32
    %c0_i32_0 = arith.constant 0 : i32
    return %arg0, %c0_i32 : i32, i32
  }
  func.func @transform_1(%arg0: i32) -> (i32, i32) {
    %c0_i32 = arith.constant 0 : i32
    %c0_i32_0 = arith.constant 0 : i32
    %c0_i32_1 = arith.constant 0 : i32
    return %c0_i32, %c0_i32_0 : i32, i32
  }
  func.func @transform_2(%arg0: i32) -> (i32, i32) {
    %c0_i32 = arith.constant 0 : i32
    %c0_i32_0 = arith.constant 0 : i32
    return %arg0, %c0_i32 : i32, i32
  }
  func.func @transform_3(%arg0: i32) -> (i32, i32) {
    %c0_i32 = arith.constant 0 : i32
    %c0_i32_0 = arith.constant 0 : i32
    %c0_i32_1 = arith.constant 0 : i32
    return %c0_i32, %c0_i32_0 : i32, i32
  }
  func.func @transform_4(%arg0: i32) -> (i32, i32) {
    %c0_i32 = arith.constant 0 : i32
    %c0_i32_0 = arith.constant 0 : i32
    %c0_i32_1 = arith.constant 0 : i32
    return %c0_i32, %c0_i32_0 : i32, i32
  }
  func.func @transform_5(%arg0: i32) -> (i32, i32) {
    %c0_i32 = arith.constant 0 : i32
    %c0_i32_0 = arith.constant 0 : i32
    return %arg0, %c0_i32 : i32, i32
  }
}

module attributes {stable_mosaic.version = 11 : i64} {
  func.func @_ffn_kernel(%arg0: i32, %arg1: memref<16x32xbf16, #tpu.memory_space<vmem>>, %arg2: memref<32x64xbf16, #tpu.memory_space<vmem>>, %arg3: memref<1x64xf32, #tpu.memory_space<vmem>>, %arg4: memref<64x32xbf16, #tpu.memory_space<vmem>>, %arg5: memref<1x32xf32, #tpu.memory_space<vmem>>, %arg6: memref<1x32xf32, #tpu.memory_space<vmem>>, %arg7: memref<1x32xf32, #tpu.memory_space<vmem>>, %arg8: memref<16x32xbf16, #tpu.memory_space<vmem>>) attributes {dimension_semantics = [#tpu.dimension_semantics<parallel>], iteration_bounds = array<i64: 1>, scalar_prefetch = 0 : i64, scratch_operands = 0 : i64, tpu.core_type = #tpu.core_type<tc>, window_params = [{transform_indices = @transform_0, window_bounds = array<i64: 16, 32>}, {pipeline_mode = #tpu.pipeline_mode<synchronous>, transform_indices = @transform_1, window_bounds = array<i64: 32, 64>}, {pipeline_mode = #tpu.pipeline_mode<synchronous>, transform_indices = @transform_2, window_bounds = array<i64: 1, 64>}, {pipeline_mode = #tpu.pipeline_mode<synchronous>, transform_indices = @transform_3, window_bounds = array<i64: 64, 32>}, {pipeline_mode = #tpu.pipeline_mode<synchronous>, transform_indices = @transform_4, window_bounds = array<i64: 1, 32>}, {pipeline_mode = #tpu.pipeline_mode<synchronous>, transform_indices = @transform_5, window_bounds = array<i64: 1, 32>}, {pipeline_mode = #tpu.pipeline_mode<synchronous>, transform_indices = @transform_6, window_bounds = array<i64: 1, 32>}, {transform_indices = @transform_7, window_bounds = array<i64: 16, 32>}]} {
    %c0 = arith.constant 0 : index
    %c0_0 = arith.constant 0 : index
    %0 = vector.load %arg1[%c0, %c0_0] : memref<16x32xbf16, #tpu.memory_space<vmem>>, vector<16x32xbf16>
    %c0_1 = arith.constant 0 : index
    %c0_2 = arith.constant 0 : index
    %1 = vector.load %arg2[%c0_1, %c0_2] : memref<32x64xbf16, #tpu.memory_space<vmem>>, vector<32x64xbf16>
    %cst = arith.constant dense<0.000000e+00> : vector<16x64xf32>
    %2 = tpu.matmul %0, %1, %cst {dimension_numbers = #tpu.dot_dimension_numbers<[1], [0], [0], [1], [0, 0, 1, 1], [], []>} : vector<16x32xbf16>, vector<32x64xbf16>, vector<16x64xf32> -> vector<16x64xf32>
    %c0_3 = arith.constant 0 : index
    %c0_4 = arith.constant 0 : index
    %3 = vector.load %arg3[%c0_3, %c0_4] : memref<1x64xf32, #tpu.memory_space<vmem>>, vector<1x64xf32>
    %4 = vector.broadcast %3 : vector<1x64xf32> to vector<16x64xf32>
    %5 = arith.addf %2, %4 : vector<16x64xf32>
    %cst_5 = arith.constant 0.000000e+00 : f32
    %6 = vector.broadcast %cst_5 : f32 to vector<16x64xf32>
    %7 = arith.maximumf %5, %6 : vector<16x64xf32>
    %8 = arith.truncf %7 : vector<16x64xf32> to vector<16x64xbf16>
    %c0_6 = arith.constant 0 : index
    %c0_7 = arith.constant 0 : index
    %9 = vector.load %arg4[%c0_6, %c0_7] : memref<64x32xbf16, #tpu.memory_space<vmem>>, vector<64x32xbf16>
    %cst_8 = arith.constant dense<0.000000e+00> : vector<16x32xf32>
    %10 = tpu.matmul %8, %9, %cst_8 {dimension_numbers = #tpu.dot_dimension_numbers<[1], [0], [0], [1], [0, 0, 1, 1], [], []>} : vector<16x64xbf16>, vector<64x32xbf16>, vector<16x32xf32> -> vector<16x32xf32>
    %c0_9 = arith.constant 0 : index
    %c0_10 = arith.constant 0 : index
    %11 = vector.load %arg5[%c0_9, %c0_10] : memref<1x32xf32, #tpu.memory_space<vmem>>, vector<1x32xf32>
    %12 = vector.broadcast %11 : vector<1x32xf32> to vector<16x32xf32>
    %13 = arith.addf %10, %12 : vector<16x32xf32>
    %14 = arith.extf %0 : vector<16x32xbf16> to vector<16x32xf32>
    %15 = arith.addf %13, %14 : vector<16x32xf32>
    %cst_11 = arith.constant dense<0.000000e+00> : vector<16xf32>
    %16 = vector.multi_reduction <add>, %15, %cst_11 [1] : vector<16x32xf32> to vector<16xf32>
    %17 = vector.shape_cast %16 : vector<16xf32> to vector<16x1xf32>
    %cst_12 = arith.constant 3.200000e+01 : f32
    %18 = vector.broadcast %cst_12 : f32 to vector<16x1xf32>
    %19 = arith.divf %17, %18 : vector<16x1xf32>
    %20 = vector.broadcast %19 : vector<16x1xf32> to vector<16x32xf32>
    %21 = arith.subf %15, %20 : vector<16x32xf32>
    %22 = arith.mulf %21, %21 : vector<16x32xf32>
    %cst_13 = arith.constant dense<0.000000e+00> : vector<16xf32>
    %23 = vector.multi_reduction <add>, %22, %cst_13 [1] : vector<16x32xf32> to vector<16xf32>
    %24 = vector.shape_cast %23 : vector<16xf32> to vector<16x1xf32>
    %cst_14 = arith.constant 3.200000e+01 : f32
    %25 = vector.broadcast %cst_14 : f32 to vector<16x1xf32>
    %26 = arith.divf %24, %25 : vector<16x1xf32>
    %27 = vector.broadcast %19 : vector<16x1xf32> to vector<16x32xf32>
    %28 = arith.subf %15, %27 : vector<16x32xf32>
    %cst_15 = arith.constant 9.99999997E-7 : f32
    %29 = vector.broadcast %cst_15 : f32 to vector<16x1xf32>
    %30 = arith.addf %26, %29 : vector<16x1xf32>
    %31 = math.rsqrt %30 : vector<16x1xf32>
    %32 = vector.broadcast %31 : vector<16x1xf32> to vector<16x32xf32>
    %33 = arith.mulf %28, %32 : vector<16x32xf32>
    %c0_16 = arith.constant 0 : index
    %c0_17 = arith.constant 0 : index
    %34 = vector.load %arg6[%c0_16, %c0_17] : memref<1x32xf32, #tpu.memory_space<vmem>>, vector<1x32xf32>
    %35 = vector.broadcast %34 : vector<1x32xf32> to vector<16x32xf32>
    %36 = arith.mulf %33, %35 : vector<16x32xf32>
    %c0_18 = arith.constant 0 : index
    %c0_19 = arith.constant 0 : index
    %37 = vector.load %arg7[%c0_18, %c0_19] : memref<1x32xf32, #tpu.memory_space<vmem>>, vector<1x32xf32>
    %38 = vector.broadcast %37 : vector<1x32xf32> to vector<16x32xf32>
    %39 = arith.addf %36, %38 : vector<16x32xf32>
    %40 = arith.truncf %39 : vector<16x32xf32> to vector<16x32xbf16>
    %c0_20 = arith.constant 0 : index
    %c0_21 = arith.constant 0 : index
    %41 = vector.load %arg8[%c0_20, %c0_21] : memref<16x32xbf16, #tpu.memory_space<vmem>>, vector<16x32xbf16>
    tpu.vector_store %arg8[%c0_20, %c0_21], %40 {strides = array<i32>} : memref<16x32xbf16, #tpu.memory_space<vmem>>, vector<16x32xbf16>,
    return
  }
  func.func @transform_0(%arg0: i32) -> (i32, i32) {
    %c0_i32 = arith.constant 0 : i32
    %c0_i32_0 = arith.constant 0 : i32
    return %arg0, %c0_i32 : i32, i32
  }
  func.func @transform_1(%arg0: i32) -> (i32, i32) {
    %c0_i32 = arith.constant 0 : i32
    %c0_i32_0 = arith.constant 0 : i32
    %c0_i32_1 = arith.constant 0 : i32
    return %c0_i32, %c0_i32_0 : i32, i32
  }
  func.func @transform_2(%arg0: i32) -> (i32, i32) {
    %c0_i32 = arith.constant 0 : i32
    %c0_i32_0 = arith.constant 0 : i32
    %c0_i32_1 = arith.constant 0 : i32
    return %c0_i32, %c0_i32_0 : i32, i32
  }
  func.func @transform_3(%arg0: i32) -> (i32, i32) {
    %c0_i32 = arith.constant 0 : i32
    %c0_i32_0 = arith.constant 0 : i32
    %c0_i32_1 = arith.constant 0 : i32
    return %c0_i32, %c0_i32_0 : i32, i32
  }
  func.func @transform_4(%arg0: i32) -> (i32, i32) {
    %c0_i32 = arith.constant 0 : i32
    %c0_i32_0 = arith.constant 0 : i32
    %c0_i32_1 = arith.constant 0 : i32
    return %c0_i32, %c0_i32_0 : i32, i32
  }
  func.func @transform_5(%arg0: i32) -> (i32, i32) {
    %c0_i32 = arith.constant 0 : i32
    %c0_i32_0 = arith.constant 0 : i32
    %c0_i32_1 = arith.constant 0 : i32
    return %c0_i32, %c0_i32_0 : i32, i32
  }
  func.func @transform_6(%arg0: i32) -> (i32, i32) {
    %c0_i32 = arith.constant 0 : i32
    %c0_i32_0 = arith.constant 0 : i32
    %c0_i32_1 = arith.constant 0 : i32
    return %c0_i32, %c0_i32_0 : i32, i32
  }
  func.func @transform_7(%arg0: i32) -> (i32, i32) {
    %c0_i32 = arith.constant 0 : i32
    %c0_i32_0 = arith.constant 0 : i32
    return %arg0, %c0_i32 : i32, i32
  }
}

module attributes {stable_mosaic.version = 11 : i64} {
  func.func @_proj_kernel(%arg0: i32, %arg1: memref<16x32xbf16, #tpu.memory_space<vmem>>, %arg2: memref<32x32xbf16, #tpu.memory_space<vmem>>, %arg3: memref<16x32xbf16, #tpu.memory_space<vmem>>) attributes {dimension_semantics = [#tpu.dimension_semantics<parallel>], iteration_bounds = array<i64: 1>, scalar_prefetch = 0 : i64, scratch_operands = 0 : i64, tpu.core_type = #tpu.core_type<tc>, window_params = [{transform_indices = @transform_0, window_bounds = array<i64: 16, 32>}, {pipeline_mode = #tpu.pipeline_mode<synchronous>, transform_indices = @transform_1, window_bounds = array<i64: 32, 32>}, {transform_indices = @transform_2, window_bounds = array<i64: 16, 32>}]} {
    %c0 = arith.constant 0 : index
    %c0_0 = arith.constant 0 : index
    %0 = vector.load %arg1[%c0, %c0_0] : memref<16x32xbf16, #tpu.memory_space<vmem>>, vector<16x32xbf16>
    %c0_1 = arith.constant 0 : index
    %c0_2 = arith.constant 0 : index
    %1 = vector.load %arg2[%c0_1, %c0_2] : memref<32x32xbf16, #tpu.memory_space<vmem>>, vector<32x32xbf16>
    %cst = arith.constant dense<0.000000e+00> : vector<16x32xf32>
    %2 = tpu.matmul %0, %1, %cst {dimension_numbers = #tpu.dot_dimension_numbers<[1], [0], [0], [1], [0, 0, 1, 1], [], []>} : vector<16x32xbf16>, vector<32x32xbf16>, vector<16x32xf32> -> vector<16x32xf32>
    %3 = arith.truncf %2 : vector<16x32xf32> to vector<16x32xbf16>
    %c0_3 = arith.constant 0 : index
    %c0_4 = arith.constant 0 : index
    %4 = vector.load %arg3[%c0_3, %c0_4] : memref<16x32xbf16, #tpu.memory_space<vmem>>, vector<16x32xbf16>
    tpu.vector_store %arg3[%c0_3, %c0_4], %3 {strides = array<i32>} : memref<16x32xbf16, #tpu.memory_space<vmem>>, vector<16x32xbf16>,
    return
  }
  func.func @transform_0(%arg0: i32) -> (i32, i32) {
    %c0_i32 = arith.constant 0 : i32
    %c0_i32_0 = arith.constant 0 : i32
    return %arg0, %c0_i32 : i32, i32
  }
  func.func @transform_1(%arg0: i32) -> (i32, i32) {
    %c0_i32 = arith.constant 0 : i32
    %c0_i32_0 = arith.constant 0 : i32
    %c0_i32_1 = arith.constant 0 : i32
    return %c0_i32, %c0_i32_0 : i32, i32
  }
  func.func @transform_2(%arg0: i32) -> (i32, i32) {
    %c0_i32 = arith.constant 0 : i32
    %c0_i32_0 = arith.constant 0 : i32
    return %arg0, %c0_i32 : i32, i32
  }
}

module attributes {stable_mosaic.version = 11 : i64} {
  func.func @_proj_kernel(%arg0: i32, %arg1: memref<16x32xbf16, #tpu.memory_space<vmem>>, %arg2: memref<32x32xbf16, #tpu.memory_space<vmem>>, %arg3: memref<32x32xbf16, #tpu.memory_space<vmem>>, %arg4: memref<16x32xbf16, #tpu.memory_space<vmem>>, %arg5: memref<16x32xbf16, #tpu.memory_space<vmem>>) attributes {dimension_semantics = [#tpu.dimension_semantics<parallel>], iteration_bounds = array<i64: 1>, scalar_prefetch = 0 : i64, scratch_operands = 0 : i64, tpu.core_type = #tpu.core_type<tc>, window_params = [{transform_indices = @transform_0, window_bounds = array<i64: 16, 32>}, {pipeline_mode = #tpu.pipeline_mode<synchronous>, transform_indices = @transform_1, window_bounds = array<i64: 32, 32>}, {pipeline_mode = #tpu.pipeline_mode<synchronous>, transform_indices = @transform_2, window_bounds = array<i64: 32, 32>}, {transform_indices = @transform_3, window_bounds = array<i64: 16, 32>}, {transform_indices = @transform_4, window_bounds = array<i64: 16, 32>}]} {
    %c0 = arith.constant 0 : index
    %c0_0 = arith.constant 0 : index
    %0 = vector.load %arg1[%c0, %c0_0] : memref<16x32xbf16, #tpu.memory_space<vmem>>, vector<16x32xbf16>
    %c0_1 = arith.constant 0 : index
    %c0_2 = arith.constant 0 : index
    %1 = vector.load %arg2[%c0_1, %c0_2] : memref<32x32xbf16, #tpu.memory_space<vmem>>, vector<32x32xbf16>
    %cst = arith.constant dense<0.000000e+00> : vector<16x32xf32>
    %2 = tpu.matmul %0, %1, %cst {dimension_numbers = #tpu.dot_dimension_numbers<[1], [0], [0], [1], [0, 0, 1, 1], [], []>} : vector<16x32xbf16>, vector<32x32xbf16>, vector<16x32xf32> -> vector<16x32xf32>
    %3 = arith.truncf %2 : vector<16x32xf32> to vector<16x32xbf16>
    %c0_3 = arith.constant 0 : index
    %c0_4 = arith.constant 0 : index
    %4 = vector.load %arg4[%c0_3, %c0_4] : memref<16x32xbf16, #tpu.memory_space<vmem>>, vector<16x32xbf16>
    tpu.vector_store %arg4[%c0_3, %c0_4], %3 {strides = array<i32>} : memref<16x32xbf16, #tpu.memory_space<vmem>>, vector<16x32xbf16>,
    %c0_5 = arith.constant 0 : index
    %c0_6 = arith.constant 0 : index
    %5 = vector.load %arg3[%c0_5, %c0_6] : memref<32x32xbf16, #tpu.memory_space<vmem>>, vector<32x32xbf16>
    %cst_7 = arith.constant dense<0.000000e+00> : vector<16x32xf32>
    %6 = tpu.matmul %0, %5, %cst_7 {dimension_numbers = #tpu.dot_dimension_numbers<[1], [0], [0], [1], [0, 0, 1, 1], [], []>} : vector<16x32xbf16>, vector<32x32xbf16>, vector<16x32xf32> -> vector<16x32xf32>
    %7 = arith.truncf %6 : vector<16x32xf32> to vector<16x32xbf16>
    %c0_8 = arith.constant 0 : index
    %c0_9 = arith.constant 0 : index
    %8 = vector.load %arg5[%c0_8, %c0_9] : memref<16x32xbf16, #tpu.memory_space<vmem>>, vector<16x32xbf16>
    tpu.vector_store %arg5[%c0_8, %c0_9], %7 {strides = array<i32>} : memref<16x32xbf16, #tpu.memory_space<vmem>>, vector<16x32xbf16>,
    return
  }
  func.func @transform_0(%arg0: i32) -> (i32, i32) {
    %c0_i32 = arith.constant 0 : i32
    %c0_i32_0 = arith.constant 0 : i32
    return %arg0, %c0_i32 : i32, i32
  }
  func.func @transform_1(%arg0: i32) -> (i32, i32) {
    %c0_i32 = arith.constant 0 : i32
    %c0_i32_0 = arith.constant 0 : i32
    %c0_i32_1 = arith.constant 0 : i32
    return %c0_i32, %c0_i32_0 : i32, i32
  }
  func.func @transform_2(%arg0: i32) -> (i32, i32) {
    %c0_i32 = arith.constant 0 : i32
    %c0_i32_0 = arith.constant 0 : i32
    %c0_i32_1 = arith.constant 0 : i32
    return %c0_i32, %c0_i32_0 : i32, i32
  }
  func.func @transform_3(%arg0: i32) -> (i32, i32) {
    %c0_i32 = arith.constant 0 : i32
    %c0_i32_0 = arith.constant 0 : i32
    return %arg0, %c0_i32 : i32, i32
  }
  func.func @transform_4(%arg0: i32) -> (i32, i32) {
    %c0_i32 = arith.constant 0 : i32
    %c0_i32_0 = arith.constant 0 : i32
    return %arg0, %c0_i32 : i32, i32
  }
}

module attributes {stable_mosaic.version = 11 : i64} {
  func.func @_attn_kernel(%arg0: i32, %arg1: memref<1x8x32xbf16, #tpu.memory_space<vmem>>, %arg2: memref<1x8x32xbf16, #tpu.memory_space<vmem>>, %arg3: memref<1x8x32xbf16, #tpu.memory_space<vmem>>, %arg4: memref<1x1x8xi32, #tpu.memory_space<vmem>>, %arg5: memref<1x8x32xbf16, #tpu.memory_space<vmem>>) attributes {dimension_semantics = [#tpu.dimension_semantics<parallel>], iteration_bounds = array<i64: 2>, scalar_prefetch = 0 : i64, scratch_operands = 0 : i64, tpu.core_type = #tpu.core_type<tc>, window_params = [{transform_indices = @transform_0, window_bounds = array<i64: 1, 8, 32>}, {transform_indices = @transform_1, window_bounds = array<i64: 1, 8, 32>}, {transform_indices = @transform_2, window_bounds = array<i64: 1, 8, 32>}, {transform_indices = @transform_3, window_bounds = array<i64: 1, 1, 8>}, {transform_indices = @transform_4, window_bounds = array<i64: 1, 8, 32>}]} {
    %c0 = arith.constant 0 : index
    %c0_0 = arith.constant 0 : index
    %c0_1 = arith.constant 0 : index
    %0 = vector.load %arg4[%c0, %c0_0, %c0_1] : memref<1x1x8xi32, #tpu.memory_space<vmem>>, vector<1x1x8xi32>
    %1 = vector.shape_cast %0 : vector<1x1x8xi32> to vector<1x8xi32>
    %c0_i32 = arith.constant 0 : i32
    %2 = vector.broadcast %c0_i32 : i32 to vector<1x8xi32>
    %3 = arith.cmpi ne, %1, %2 : vector<1x8xi32>
    %4 = tpu.iota {dimensions = array<i32: 0>} : vector<8x8xi32>
    %5 = tpu.iota {dimensions = array<i32: 1>} : vector<8x8xi32>
    %6 = arith.cmpi sle, %5, %4 : vector<8x8xi32>
    %7 = vector.broadcast %3 : vector<1x8xi1> to vector<8x8xi1>
    %8 = arith.andi %7, %6 : vector<8x8xi1>
    %c0_2 = arith.constant 0 : index
    %c0_3 = arith.constant 0 : index
    %c0_4 = arith.constant 0 : index
    %9 = vector.load %arg1[%c0_2, %c0_3, %c0_4] : memref<1x8x32xbf16, #tpu.memory_space<vmem>>, vector<1x8x32xbf16>
    %10 = vector.shape_cast %9 : vector<1x8x32xbf16> to vector<8x32xbf16>
    %c0_5 = arith.constant 0 : index
    %c0_6 = arith.constant 0 : index
    %c0_7 = arith.constant 0 : index
    %11 = vector.load %arg2[%c0_5, %c0_6, %c0_7] : memref<1x8x32xbf16, #tpu.memory_space<vmem>>, vector<1x8x32xbf16>
    %12 = vector.shape_cast %11 : vector<1x8x32xbf16> to vector<8x32xbf16>
    %c0_8 = arith.constant 0 : index
    %c0_9 = arith.constant 0 : index
    %c0_10 = arith.constant 0 : index
    %13 = vector.load %arg3[%c0_8, %c0_9, %c0_10] : memref<1x8x32xbf16, #tpu.memory_space<vmem>>, vector<1x8x32xbf16>
    %14 = vector.shape_cast %13 : vector<1x8x32xbf16> to vector<8x32xbf16>
    %15 = vector.extract_strided_slice %10 {offsets = [0, 0], sizes = [8, 8], strides = [1, 1]} : vector<8x32xbf16> to vector<8x8xbf16>
    %16 = vector.extract_strided_slice %12 {offsets = [0, 0], sizes = [8, 8], strides = [1, 1]} : vector<8x32xbf16> to vector<8x8xbf16>
    %17 = vector.extract_strided_slice %14 {offsets = [0, 0], sizes = [8, 8], strides = [1, 1]} : vector<8x32xbf16> to vector<8x8xbf16>
    %cst = arith.constant dense<0.000000e+00> : vector<8x8xf32>
    %18 = tpu.matmul %15, %16, %cst {dimension_numbers = #tpu.dot_dimension_numbers<[1], [1], [0], [0], [0, 0, 1, 0], [], []>} : vector<8x8xbf16>, vector<8x8xbf16>, vector<8x8xf32> -> vector<8x8xf32>
    %cst_11 = arith.constant 0.353553385 : f32
    %19 = vector.broadcast %cst_11 : f32 to vector<8x8xf32>
    %20 = arith.mulf %18, %19 : vector<8x8xf32>
    %cst_12 = arith.constant -1.000000e+09 : f32
    %21 = vector.broadcast %cst_12 : f32 to vector<8x8xf32>
    %22 = arith.select %8, %20, %21 : vector<8x8xi1>, vector<8x8xf32>
    %cst_13 = arith.constant dense<0xFF800000> : vector<8xf32>
    %23 = vector.multi_reduction <maximumf>, %22, %cst_13 [1] : vector<8x8xf32> to vector<8xf32>
    %24 = vector.shape_cast %23 : vector<8xf32> to vector<8x1xf32>
    %25 = vector.broadcast %24 : vector<8x1xf32> to vector<8x8xf32>
    %26 = arith.subf %22, %25 : vector<8x8xf32>
    %27 = math.exp %26 : vector<8x8xf32>
    %cst_14 = arith.constant dense<0.000000e+00> : vector<8xf32>
    %28 = vector.multi_reduction <add>, %27, %cst_14 [1] : vector<8x8xf32> to vector<8xf32>
    %29 = vector.shape_cast %28 : vector<8xf32> to vector<8x1xf32>
    %30 = tpu.reciprocal %29 {approx = true} : vector<8x1xf32> -> vector<8x1xf32>
    %31 = vector.broadcast %30 : vector<8x1xf32> to vector<8x8xf32>
    %32 = arith.mulf %27, %31 : vector<8x8xf32>
    %33 = arith.truncf %32 : vector<8x8xf32> to vector<8x8xbf16>
    %cst_15 = arith.constant dense<0.000000e+00> : vector<8x8xf32>
    %34 = tpu.matmul %33, %17, %cst_15 {dimension_numbers = #tpu.dot_dimension_numbers<[1], [0], [0], [1], [0, 0, 1, 1], [], []>} : vector<8x8xbf16>, vector<8x8xbf16>, vector<8x8xf32> -> vector<8x8xf32>
    %35 = arith.truncf %34 : vector<8x8xf32> to vector<8x8xbf16>
    %36 = vector.extract_strided_slice %10 {offsets = [0, 8], sizes = [8, 8], strides = [1, 1]} : vector<8x32xbf16> to vector<8x8xbf16>
    %37 = vector.extract_strided_slice %12 {offsets = [0, 8], sizes = [8, 8], strides = [1, 1]} : vector<8x32xbf16> to vector<8x8xbf16>
    %38 = vector.extract_strided_slice %14 {offsets = [0, 8], sizes = [8, 8], strides = [1, 1]} : vector<8x32xbf16> to vector<8x8xbf16>
    %cst_16 = arith.constant dense<0.000000e+00> : vector<8x8xf32>
    %39 = tpu.matmul %36, %37, %cst_16 {dimension_numbers = #tpu.dot_dimension_numbers<[1], [1], [0], [0], [0, 0, 1, 0], [], []>} : vector<8x8xbf16>, vector<8x8xbf16>, vector<8x8xf32> -> vector<8x8xf32>
    %cst_17 = arith.constant 0.353553385 : f32
    %40 = vector.broadcast %cst_17 : f32 to vector<8x8xf32>
    %41 = arith.mulf %39, %40 : vector<8x8xf32>
    %cst_18 = arith.constant -1.000000e+09 : f32
    %42 = vector.broadcast %cst_18 : f32 to vector<8x8xf32>
    %43 = arith.select %8, %41, %42 : vector<8x8xi1>, vector<8x8xf32>
    %cst_19 = arith.constant dense<0xFF800000> : vector<8xf32>
    %44 = vector.multi_reduction <maximumf>, %43, %cst_19 [1] : vector<8x8xf32> to vector<8xf32>
    %45 = vector.shape_cast %44 : vector<8xf32> to vector<8x1xf32>
    %46 = vector.broadcast %45 : vector<8x1xf32> to vector<8x8xf32>
    %47 = arith.subf %43, %46 : vector<8x8xf32>
    %48 = math.exp %47 : vector<8x8xf32>
    %cst_20 = arith.constant dense<0.000000e+00> : vector<8xf32>
    %49 = vector.multi_reduction <add>, %48, %cst_20 [1] : vector<8x8xf32> to vector<8xf32>
    %50 = vector.shape_cast %49 : vector<8xf32> to vector<8x1xf32>
    %51 = tpu.reciprocal %50 {approx = true} : vector<8x1xf32> -> vector<8x1xf32>
    %52 = vector.broadcast %51 : vector<8x1xf32> to vector<8x8xf32>
    %53 = arith.mulf %48, %52 : vector<8x8xf32>
    %54 = arith.truncf %53 : vector<8x8xf32> to vector<8x8xbf16>
    %cst_21 = arith.constant dense<0.000000e+00> : vector<8x8xf32>
    %55 = tpu.matmul %54, %38, %cst_21 {dimension_numbers = #tpu.dot_dimension_numbers<[1], [0], [0], [1], [0, 0, 1, 1], [], []>} : vector<8x8xbf16>, vector<8x8xbf16>, vector<8x8xf32> -> vector<8x8xf32>
    %56 = arith.truncf %55 : vector<8x8xf32> to vector<8x8xbf16>
    %57 = vector.extract_strided_slice %10 {offsets = [0, 16], sizes = [8, 8], strides = [1, 1]} : vector<8x32xbf16> to vector<8x8xbf16>
    %58 = vector.extract_strided_slice %12 {offsets = [0, 16], sizes = [8, 8], strides = [1, 1]} : vector<8x32xbf16> to vector<8x8xbf16>
    %59 = vector.extract_strided_slice %14 {offsets = [0, 16], sizes = [8, 8], strides = [1, 1]} : vector<8x32xbf16> to vector<8x8xbf16>
    %cst_22 = arith.constant dense<0.000000e+00> : vector<8x8xf32>
    %60 = tpu.matmul %57, %58, %cst_22 {dimension_numbers = #tpu.dot_dimension_numbers<[1], [1], [0], [0], [0, 0, 1, 0], [], []>} : vector<8x8xbf16>, vector<8x8xbf16>, vector<8x8xf32> -> vector<8x8xf32>
    %cst_23 = arith.constant 0.353553385 : f32
    %61 = vector.broadcast %cst_23 : f32 to vector<8x8xf32>
    %62 = arith.mulf %60, %61 : vector<8x8xf32>
    %cst_24 = arith.constant -1.000000e+09 : f32
    %63 = vector.broadcast %cst_24 : f32 to vector<8x8xf32>
    %64 = arith.select %8, %62, %63 : vector<8x8xi1>, vector<8x8xf32>
    %cst_25 = arith.constant dense<0xFF800000> : vector<8xf32>
    %65 = vector.multi_reduction <maximumf>, %64, %cst_25 [1] : vector<8x8xf32> to vector<8xf32>
    %66 = vector.shape_cast %65 : vector<8xf32> to vector<8x1xf32>
    %67 = vector.broadcast %66 : vector<8x1xf32> to vector<8x8xf32>
    %68 = arith.subf %64, %67 : vector<8x8xf32>
    %69 = math.exp %68 : vector<8x8xf32>
    %cst_26 = arith.constant dense<0.000000e+00> : vector<8xf32>
    %70 = vector.multi_reduction <add>, %69, %cst_26 [1] : vector<8x8xf32> to vector<8xf32>
    %71 = vector.shape_cast %70 : vector<8xf32> to vector<8x1xf32>
    %72 = tpu.reciprocal %71 {approx = true} : vector<8x1xf32> -> vector<8x1xf32>
    %73 = vector.broadcast %72 : vector<8x1xf32> to vector<8x8xf32>
    %74 = arith.mulf %69, %73 : vector<8x8xf32>
    %75 = arith.truncf %74 : vector<8x8xf32> to vector<8x8xbf16>
    %cst_27 = arith.constant dense<0.000000e+00> : vector<8x8xf32>
    %76 = tpu.matmul %75, %59, %cst_27 {dimension_numbers = #tpu.dot_dimension_numbers<[1], [0], [0], [1], [0, 0, 1, 1], [], []>} : vector<8x8xbf16>, vector<8x8xbf16>, vector<8x8xf32> -> vector<8x8xf32>
    %77 = arith.truncf %76 : vector<8x8xf32> to vector<8x8xbf16>
    %78 = vector.extract_strided_slice %10 {offsets = [0, 24], sizes = [8, 8], strides = [1, 1]} : vector<8x32xbf16> to vector<8x8xbf16>
    %79 = vector.extract_strided_slice %12 {offsets = [0, 24], sizes = [8, 8], strides = [1, 1]} : vector<8x32xbf16> to vector<8x8xbf16>
    %80 = vector.extract_strided_slice %14 {offsets = [0, 24], sizes = [8, 8], strides = [1, 1]} : vector<8x32xbf16> to vector<8x8xbf16>
    %cst_28 = arith.constant dense<0.000000e+00> : vector<8x8xf32>
    %81 = tpu.matmul %78, %79, %cst_28 {dimension_numbers = #tpu.dot_dimension_numbers<[1], [1], [0], [0], [0, 0, 1, 0], [], []>} : vector<8x8xbf16>, vector<8x8xbf16>, vector<8x8xf32> -> vector<8x8xf32>
    %cst_29 = arith.constant 0.353553385 : f32
    %82 = vector.broadcast %cst_29 : f32 to vector<8x8xf32>
    %83 = arith.mulf %81, %82 : vector<8x8xf32>
    %cst_30 = arith.constant -1.000000e+09 : f32
    %84 = vector.broadcast %cst_30 : f32 to vector<8x8xf32>
    %85 = arith.select %8, %83, %84 : vector<8x8xi1>, vector<8x8xf32>
    %cst_31 = arith.constant dense<0xFF800000> : vector<8xf32>
    %86 = vector.multi_reduction <maximumf>, %85, %cst_31 [1] : vector<8x8xf32> to vector<8xf32>
    %87 = vector.shape_cast %86 : vector<8xf32> to vector<8x1xf32>
    %88 = vector.broadcast %87 : vector<8x1xf32> to vector<8x8xf32>
    %89 = arith.subf %85, %88 : vector<8x8xf32>
    %90 = math.exp %89 : vector<8x8xf32>
    %cst_32 = arith.constant dense<0.000000e+00> : vector<8xf32>
    %91 = vector.multi_reduction <add>, %90, %cst_32 [1] : vector<8x8xf32> to vector<8xf32>
    %92 = vector.shape_cast %91 : vector<8xf32> to vector<8x1xf32>
    %93 = tpu.reciprocal %92 {approx = true} : vector<8x1xf32> -> vector<8x1xf32>
    %94 = vector.broadcast %93 : vector<8x1xf32> to vector<8x8xf32>
    %95 = arith.mulf %90, %94 : vector<8x8xf32>
    %96 = arith.truncf %95 : vector<8x8xf32> to vector<8x8xbf16>
    %cst_33 = arith.constant dense<0.000000e+00> : vector<8x8xf32>
    %97 = tpu.matmul %96, %80, %cst_33 {dimension_numbers = #tpu.dot_dimension_numbers<[1], [0], [0], [1], [0, 0, 1, 1], [], []>} : vector<8x8xbf16>, vector<8x8xbf16>, vector<8x8xf32> -> vector<8x8xf32>
    %98 = arith.truncf %97 : vector<8x8xf32> to vector<8x8xbf16>
    %99 = tpu.concatenate %35, %56, %77, %98 in 1 : vector<8x8xbf16>, vector<8x8xbf16>, vector<8x8xbf16>, vector<8x8xbf16> -> vector<8x32xbf16>
    %c0_34 = arith.constant 0 : index
    %c0_35 = arith.constant 0 : index
    %c0_36 = arith.constant 0 : index
    %100 = vector.load %arg5[%c0_34, %c0_35, %c0_36] : memref<1x8x32xbf16, #tpu.memory_space<vmem>>, vector<1x8x32xbf16>
    %101 = vector.shape_cast %100 : vector<1x8x32xbf16> to vector<8x32xbf16>
    %102 = vector.shape_cast %99 : vector<8x32xbf16> to vector<1x8x32xbf16>
    tpu.vector_store %arg5[%c0_34, %c0_35, %c0_36], %102 {strides = array<i32>} : memref<1x8x32xbf16, #tpu.memory_space<vmem>>, vector<1x8x32xbf16>,
    return
  }
  func.func @transform_0(%arg0: i32) -> (i32, i32, i32) {
    %c0_i32 = arith.constant 0 : i32
    %c0_i32_0 = arith.constant 0 : i32
    %c0_i32_1 = arith.constant 0 : i32
    return %arg0, %c0_i32, %c0_i32_0 : i32, i32, i32
  }
  func.func @transform_1(%arg0: i32) -> (i32, i32, i32) {
    %c0_i32 = arith.constant 0 : i32
    %c0_i32_0 = arith.constant 0 : i32
    %c0_i32_1 = arith.constant 0 : i32
    return %arg0, %c0_i32, %c0_i32_0 : i32, i32, i32
  }
  func.func @transform_2(%arg0: i32) -> (i32, i32, i32) {
    %c0_i32 = arith.constant 0 : i32
    %c0_i32_0 = arith.constant 0 : i32
    %c0_i32_1 = arith.constant 0 : i32
    return %arg0, %c0_i32, %c0_i32_0 : i32, i32, i32
  }
  func.func @transform_3(%arg0: i32) -> (i32, i32, i32) {
    %c0_i32 = arith.constant 0 : i32
    %c0_i32_0 = arith.constant 0 : i32
    %c0_i32_1 = arith.constant 0 : i32
    return %arg0, %c0_i32, %c0_i32_0 : i32, i32, i32
  }
  func.func @transform_4(%arg0: i32) -> (i32, i32, i32) {
    %c0_i32 = arith.constant 0 : i32
    %c0_i32_0 = arith.constant 0 : i32
    %c0_i32_1 = arith.constant 0 : i32
    return %arg0, %c0_i32, %c0_i32_0 : i32, i32, i32
  }
}

module attributes {stable_mosaic.version = 11 : i64} {
  func.func @_logits_kernel(%arg0: i32, %arg1: i32, %arg2: memref<16x32xbf16, #tpu.memory_space<vmem>>, %arg3: memref<16x32xbf16, #tpu.memory_space<vmem>>, %arg4: memref<16x16xf32, #tpu.memory_space<vmem>>) attributes {dimension_semantics = [#tpu.dimension_semantics<parallel>, #tpu.dimension_semantics<parallel>], iteration_bounds = array<i64: 1, 1>, scalar_prefetch = 0 : i64, scratch_operands = 0 : i64, tpu.core_type = #tpu.core_type<tc>, window_params = [{transform_indices = @transform_0, window_bounds = array<i64: 16, 32>}, {transform_indices = @transform_1, window_bounds = array<i64: 16, 32>}, {transform_indices = @transform_2, window_bounds = array<i64: 16, 16>}]} {
    %c0 = arith.constant 0 : index
    %c0_0 = arith.constant 0 : index
    %0 = vector.load %arg2[%c0, %c0_0] : memref<16x32xbf16, #tpu.memory_space<vmem>>, vector<16x32xbf16>
    %c0_1 = arith.constant 0 : index
    %c0_2 = arith.constant 0 : index
    %1 = vector.load %arg3[%c0_1, %c0_2] : memref<16x32xbf16, #tpu.memory_space<vmem>>, vector<16x32xbf16>
    %cst = arith.constant dense<0.000000e+00> : vector<16x16xf32>
    %2 = tpu.matmul %0, %1, %cst {dimension_numbers = #tpu.dot_dimension_numbers<[1], [1], [0], [0], [0, 0, 1, 0], [], []>} : vector<16x32xbf16>, vector<16x32xbf16>, vector<16x16xf32> -> vector<16x16xf32>
    %cst_3 = arith.constant 0.176776692 : f32
    %3 = vector.broadcast %cst_3 : f32 to vector<16x16xf32>
    %4 = arith.mulf %2, %3 : vector<16x16xf32>
    %c0_4 = arith.constant 0 : index
    %c0_5 = arith.constant 0 : index
    %5 = vector.load %arg4[%c0_4, %c0_5] : memref<16x16xf32, #tpu.memory_space<vmem>>, vector<16x16xf32>
    tpu.vector_store %arg4[%c0_4, %c0_5], %4 {strides = array<i32>} : memref<16x16xf32, #tpu.memory_space<vmem>>, vector<16x16xf32>,
    return
  }
  func.func @transform_0(%arg0: i32, %arg1: i32) -> (i32, i32) {
    %c0_i32 = arith.constant 0 : i32
    %c0_i32_0 = arith.constant 0 : i32
    return %arg0, %c0_i32 : i32, i32
  }
  func.func @transform_1(%arg0: i32, %arg1: i32) -> (i32, i32) {
    %c0_i32 = arith.constant 0 : i32
    %c0_i32_0 = arith.constant 0 : i32
    return %arg1, %c0_i32 : i32, i32
  }
  func.func @transform_2(%arg0: i32, %arg1: i32) -> (i32, i32) {
    %c0_i32 = arith.constant 0 : i32
    return %arg0, %arg1 : i32, i32
  }
}

</mosaic_0001>

<bundles_post_ra>
// kernel: _lambda_.27
= control target key start
LH: loop header
LB: loop body
LE: loop exit
PB: predicated region body
PF: predicated region fallthrough
CT: control target
= control target key end

     0   :  { %vm16_vm0 = vcmask 261120   ;;  %vm70_vm1 = vcmask 257024   ;;  %s129_s0 = inlined_call_operand.vmem [shape: f32[16,32], index: 0, kind: input, shape index: {}]   ;;  %s130_s1 = inlined_call_operand.vmem [shape: f32[1,32], index: 1, kind: input, shape index: {}]   ;;  %s131_s2 = inlined_call_operand.vmem [shape: f32[1,32], index: 2, kind: input, shape index: {}]   ;;  %s132_s3 = inlined_call_operand.vmem [shape: bf16[16,32], index: 3, kind: output, shape index: {}]  }
   0x1   :  { %v14_v0 = vld [vmem:[%s129_s0] sm:$0xff]  ;;  %v15_v1 = vld [vmem:[%s129_s0 + $0x8] sm:$0xff] }
   0x2   :  { %v17_v2 = vsel %vm16_vm0, %v14_v0, 0.0  ;;  %v20_v3 = vsel %vm16_vm0, %v15_v1, 0.0  ;;  %v77_v21 = vld [vmem:[%s130_s1] ss:$0 sm:$0xff] }
   0x3   :  { %18 = vadd.xlane.f32.xlu0 %v17_v2  ;;  %v78_v23 = vld [vmem:[%s131_s2] ss:$0 sm:$0xff] }
   0x7   :  { %21 = vadd.xlane.f32.xlu0 %v20_v3 }
  0x90   :  { %v19_v4 = vpop.xlane.xlu0 %18 }
  0x91   :  { %v24_v5 = vmul.f32 0.03125, %v19_v4 }
  0x93   :  { %v26_v6 = vsub.f32 %v14_v0, %v24_v5 }
  0x94   :  { %v22_v7 = vpop.xlane.xlu0 %21 }
  0x95   :  { %v25_v8 = vmul.f32 0.03125, %v22_v7  ;;  %v28_v9 = vmul.f32 %v26_v6, %v26_v6 }
  0x97   :  { %v27_v10 = vsub.f32 %v15_v1, %v25_v8  ;;  %v30_v11 = vsel %vm16_vm0, %v28_v9, 0.0 }
  0x98   :  { %31 = vadd.xlane.f32.xlu1 %v30_v11 }
  0x99   :  { %v29_v12 = vmul.f32 %v27_v10, %v27_v10 }
  0x9b   :  { %v33_v13 = vsel %vm16_vm0, %v29_v12, 0.0 }
  0x9c   :  { %34 = vadd.xlane.f32.xlu1 %v33_v13 }
 0x125   :  { %v32_v14 = vpop.xlane.xlu1 %31 }
 0x126   :  { %v36_v15 = vmul.f32 0.03125, %v32_v14 }
 0x128   :  { %v38_v16 = vadd.f32 1e-06, %v36_v15 }
 0x129   :  { %v35_v17 = vpop.xlane.xlu1 %34 }
 0x12a   :  { %83 = vrsqrt.f32 %v38_v16  ;;  %v37_v18 = vmul.f32 0.03125, %v35_v17 }
 0x12c   :  { %v39_v19 = vadd.f32 1e-06, %v37_v18 }
 0x12e   :  { %85 = vrsqrt.f32 %v39_v19 }
 0x134   :  { %v84_v20 = vpop.eup %83 }
 0x135   :  { %v42_v22 = vmul.f32 %v84_v20, %v26_v6 }
 0x137   :  { %v51_v24 = vmul.f32 %v77_v21, %v42_v22 }
 0x138   :  { %v86_v25 = vpop.eup %85 }
 0x139   :  { %v60_v26 = vadd.f32 %v78_v23, %v51_v24  ;;  %v43_v27 = vmul.f32 %v86_v25, %v27_v10 }
 0x13b   :  { %v81_v28 = vpack.c.bf16 %v60_v26, %v60_v26  ;;  %v52_v29 = vmul.f32 %v77_v21, %v43_v27 }
 0x13d   :  { %71 = vst.msk [vmem:[%s132_s3] sm:$0xf] %vm70_vm1, %v81_v28  ;;  %v61_v30 = vadd.f32 %v78_v23, %v52_v29 }
 0x13f   :  { %v82_v31 = vpack.c.bf16 %v61_v30, %v61_v30 }
 0x141   :  { %72 = vst.msk [vmem:[%s132_s3 + $0x4] sm:$0xf] %vm70_vm1, %v82_v31 }

// kernel: _lambda_.28
= control target key start
LH: loop header
LB: loop body
LE: loop exit
PB: predicated region body
PF: predicated region fallthrough
CT: control target
= control target key end

     0   :  { %v310_v0 = vmov 0.0   ;;  %vm311_vm0 = vmmov 0   ;;  %vm44_vm1 = vcmask 261120   ;;  %vm97_vm2 = vcmask 257024   ;;  %s395_s1 = inlined_call_operand.vmem [shape: bf16[32,32], index: 1, kind: input, shape index: {}]   ;;  %s396_s2 = inlined_call_operand.vmem [shape: bf16[32,32], index: 2, kind: input, shape index: {}]   ;;  %s397_s0 = inlined_call_operand.vmem [shape: bf16[16,32], index: 0, kind: input, shape index: {}]   ;;  %s398_s3 = inlined_call_operand.vmem [shape: bf16[32,32], index: 3, kind: input, shape index: {}]   ;;  %s399_s4 = inlined_call_operand.vmem [shape: bf16[16,32], index: 4, kind: output, shape index: {0}]   ;;  %s400_s5 = inlined_call_operand.vmem [shape: bf16[16,32], index: 5, kind: output, shape index: {1}]   ;;  %s401_s6 = inlined_call_operand.vmem [shape: bf16[16,32], index: 6, kind: output, shape index: {2}]  }
   0x1   :  { %277 = vmatprep.subr.bf16.mxu0 %v310_v0  ;;  %v303_v1 = vld [vmem:[%s395_s1] sm:$0xff]   ;;  %285 = vmatprep.subr.bf16.mxu1 %v310_v0  ;;  %v304_v2 = vld [vmem:[%s395_s1 + $0x8] sm:$0xff]  }
   0x2   :  { %281 = vmatprep.mubr.msk.bf16.mxu0 %vm311_vm0, %v310_v0  ;;  %289 = vmatprep.mubr.msk.bf16.mxu1 %vm311_vm0, %v310_v0  ;;  %v305_v3 = vld [vmem:[%s396_s2] sm:$0xff]   ;;  %v308_v5 = vld [vmem:[%s396_s2 + $0x8] sm:$0xff]  }
   0x3   :  { %278 = vmatpush3.bf16.msra.mxu0 %v303_v1  ;;  %286 = vmatpush3.bf16.msra.mxu1 %v305_v3  ;;  %v306_v4 = vld [vmem:[%s397_s0] sm:$0xff]   ;;  %v309_v7 = vld [vmem:[%s398_s3 + $0x8] sm:$0xff]  }
   0x4   :  { %279 = vmatprep.subr.bf16.mxu0 %v310_v0  ;;  %287 = vmatprep.subr.bf16.mxu1 %v310_v0  ;;  %v307_v6 = vld [vmem:[%s398_s3] sm:$0xff]  }
   0x7   :  { %280 = vmatpush3.bf16.msra.mxu0 %v304_v2  ;;  %288 = vmatpush3.bf16.msra.mxu1 %v308_v5 }
   0x8   :  { %293 = vmatprep.subr.bf16.mxu0 %v310_v0 }
   0xa   :  { %282 = vmatmul.mubr.msk.bf16.vlgmr.msra.gmra.mrb[0].mxu0 %vm44_vm1, %v306_v4  ;;  %290 = vmatmul.mubr.msk.bf16.vlgmr.msra.gmra.mrb[0].mxu1 %vm44_vm1, %v306_v4 }
   0xb   :  { %294 = vmatpush3.bf16.msra.mxu0 %v307_v6  ;;  %297 = vmatprep.mubr.msk.bf16.mxu0 %vm311_vm0, %v310_v0 }
   0xc   :  { %295 = vmatprep.subr.bf16.mxu0 %v310_v0 }
   0xf   :  { %296 = vmatpush3.bf16.msra.mxu0 %v309_v7 }
  0x12   :  { %298 = vmatmul.mubr.msk.bf16.vlgmr.msra.gmra.mrb[4].mxu0 %vm44_vm1, %v306_v4 }
  0xdd   :  { %v82_v8 = vpop.f32.mrb[0].mxu0  ;;  %v150_v12 = vpop.f32.mrb[0].mxu1 }
  0xde   :  { %v262_v9 = vpack.c.bf16 %v82_v8, %v82_v8  ;;  %v283_v10 = vpop.f32.mrb[1].mxu0  ;;  %v264_v15 = vpack.c.bf16 %v150_v12, %v150_v12  ;;  %v291_v16 = vpop.f32.mrb[1].mxu1 }
  0xdf   :  { %v85_v11 = vpop.f32.mrb[2].mxu0  ;;  %v153_v17 = vpop.f32.mrb[2].mxu1 }
  0xe0   :  { %98 = vst.msk [vmem:[%s399_s4] sm:$0xf] %vm97_vm2, %v262_v9  ;;  %v263_v13 = vpack.c.bf16 %v85_v11, %v85_v11  ;;  %v284_v14 = vpop.f32.mrb[3].mxu0  ;;  %165 = vst.msk [vmem:[%s400_s5] sm:$0xf] %vm97_vm2, %v264_v15  ;;  %v265_v18 = vpack.c.bf16 %v153_v17, %v153_v17  ;;  %v292_v19 = vpop.f32.mrb[3].mxu1 }
  0xe2   :  { %99 = vst.msk [vmem:[%s399_s4 + $0x4] sm:$0xf] %vm97_vm2, %v263_v13  ;;  %166 = vst.msk [vmem:[%s400_s5 + $0x4] sm:$0xf] %vm97_vm2, %v265_v18 }
  0xe5   :  { %v217_v20 = vpop.f32.mrb[4].mxu0 }
  0xe6   :  { %v266_v21 = vpack.c.bf16 %v217_v20, %v217_v20  ;;  %v299_v22 = vpop.f32.mrb[5].mxu0 }
  0xe7   :  { %v220_v23 = vpop.f32.mrb[6].mxu0 }
  0xe8   :  { %232 = vst.msk [vmem:[%s401_s6] sm:$0xf] %vm97_vm2, %v266_v21  ;;  %v267_v24 = vpack.c.bf16 %v220_v23, %v220_v23  ;;  %v300_v25 = vpop.f32.mrb[7].mxu0 }
  0xea   :  { %233 = vst.msk [vmem:[%s401_s6 + $0x4] sm:$0xf] %vm97_vm2, %v267_v24 }

// kernel: _lambda_.29
= control target key start
LH: loop header
LB: loop body
LE: loop exit
PB: predicated region body
PF: predicated region fallthrough
CT: control target
= control target key end

     0   :  { %s981_s15 = smov 0   ;;  %s1091_s0 = inlined_call_operand.vmem [shape: bf16[2,8,32], index: 0, kind: input, shape index: {}]   ;;  %s1092_s1 = inlined_call_operand.vmem [shape: bf16[2,8,32], index: 1, kind: input, shape index: {}]   ;;  %s1093_s2 = inlined_call_operand.vmem [shape: bf16[2,8,32], index: 2, kind: input, shape index: {}]   ;;  %s1094_s3 = inlined_call_operand.vmem [shape: s32[2,1,8], index: 3, kind: input, shape index: {}]   ;;  %s1095_s4 = inlined_call_operand.vmem [shape: bf16[2,8,32], index: 4, kind: output, shape index: {}]  }
   0x1 LB: > { %s817_s16 = sadd.s32 4294967295, %s945_s15   ;;  %p821_p0 = scmp.ge.s32.totalorder %s945_s15, 1  ;;  %s945_s15 = sphi %s981_s15, %s14_s15  }
   0x2   : > { %p187_p1 = scmp.lt.s32.totalorder %s945_s15, 3 }
   0x4   : > { %p188_p2 = pnand %p821_p0, %p187_p1 }
   0x5   : > { %p222_p3 = scmp.lt.s32.totalorder (!%p188_p2), %s817_s16, 1  ;;  %v947_v0 = vmov (!%p188_p2), 0.0   ;;  %vm948_vm0 = vmmov (!%p188_p2), 0   ;;  %vm247_vm1 = vcmask (!%p188_p2), 64512   ;;  %v296_v4 = vlaneseq (!%p188_p2)  ;;  %s950_s27 = smov (!%p188_p2), 120  }
   0x6   : > { %191 = sbr.rel (%p188_p2) target bundleno = 1479 (0x5c7), region = 36  ;;  %855 = vmatprep.subr.bf16.mxu0 (!%p188_p2), %v947_v0  ;;  %857 = vmatprep.mubr.msk.bf16.mxu0 (!%p188_p2), %vm948_vm0, %v947_v0  ;;  %v949_v8 = vmov (!%p188_p2), 0   ;;  %s951_s28 = smov (!%p188_p2), 112   ;;  %vm317_vm4 = vcmask (!%p188_p2), 1043456   ;;  %vm722_vm5 = vcmask (!%p188_p2), 130048   ;;  %vm725_vm6 = vcmask (!%p188_p2), 195584  }
   0x7   : > { %861 = vmatprep.subr.bf16.mxu1 (!%p188_p2), %v947_v0  ;;  %863 = vmatprep.mubr.msk.bf16.mxu1 (!%p188_p2), %vm948_vm0, %v947_v0  ;;  %v297_v6 = vshrl.u32 (!%p188_p2), %v296_v4, 7  ;;  %s952_s29 = smov (!%p188_p2), 104   ;;  %s953_s7 = smov (!%p188_p2), 8   ;;  %vm729_vm7 = vcmask (!%p188_p2), 257024  }
   0x8   : > { %s954_s8 = smov (!%p188_p2), 16   ;;  %s955_s9 = smov (!%p188_p2), 24  }
   0x9   : > { %v298_v7 = vsub.s32 (!%p188_p2), 0, %v297_v6 }
   0xd   : > { %s1097_s16 = smov (!%p222_p3, %s817_s16), 1 }
   0xe   : > { %s995_s17 = sshll.u32 %s1097_s16, 2  ;;  %s236_s26 = scalar_lea.vmem %s1094_s3, %s1097_s16 }
   0xf   : > { %s229_s20 = scalar_lea.vmem %s1092_s1, %s995_s17  ;;  %s225_s23 = scalar_lea.vmem %s1091_s0, %s995_s17  ;;  %v242_v5 = vld [vmem:[%s236_s26] sm:$0x1] }
  0x10   : > { %v245_v1 = vld [vmem:[%s229_s20] sm:$0xf]  ;;  %vm243_vm2 = vcmp.ne.s32.totalorder %v242_v5, 0  ;;  %s233_s6 = scalar_lea.vmem %s1093_s2, %s995_s17  ;;  %s240_s12 = scalar_lea.vmem %s1095_s4, %s995_s17 }
  0x11   : > { %v252_v2 = vsel %vm247_vm1, %v245_v1, 0  ;;  %v244_v3 = vld [vmem:[%s225_s23] sm:$0xf]  ;;  %v295_v9 = vsel %vm243_vm2, 1, %v949_v8  ;;  %v829_v18 = vcombine.low %v245_v1, %v245_v1 }
  0x12   : > { %856 = vmatpush3.bf16.xpose.msra.mxu0 %v252_v2  ;;  %v1013_v10 = vrot.slane %v295_v9, %v298_v7  ;;  %v828_v19 = vcombine.low %v244_v3, %v244_v3  ;;  %v1029_v25 = vld [vmem:[%s233_s6] sm:$0xf] }
  0x13   : > { %873 = vmatprep.subr.bf16.mxu0 %v947_v0  ;;  %370 = vrot.lane.b32.xlu1 %v829_v18, %s950_s27  ;;  %v319_v26 = vsel %vm317_vm4, %v1029_v25, 0 }
  0x14   : > { %vm300_vm3 = vcmp.eq.s32.totalorder %v1013_v10, 1  ;;  %862 = vmatpush3.bf16.msra.mxu1 %v319_v26 }
  0x15   : > { %867 = vmatprep.subr.bf16.mxu1 %v947_v0 }
  0x17   : > { %365 = vrot.lane.b32.xlu1 %v828_v19, %s950_s27 }
  0x19   : > { %858 = vmatmul.mubr.msk.bf16.vlgmr.msra.gmra.mrb[0].mxu0 %vm247_vm1, %v244_v3 }
  0x1a   : > { %875 = vmatprep.mubr.msk.bf16.mxu0 %vm948_vm0, %v947_v0 }
  0x1b   : > { %484 = vrot.lane.b32.xlu1 %v828_v19, %s951_s28 }
  0x1f   : > { %599 = vrot.lane.b32.xlu1 %v829_v18, %s952_s29 }
  0x23   : > { %597 = vrot.lane.b32.xlu1 %v828_v19, %s952_s29 }
  0x85   : > { %v371_v29 = vpop.permute.xlu1 %370 }
  0x86   : > { %v376_v31 = vsel %vm247_vm1, %v371_v29, 0 }
  0x89   : > { %v366_v33 = vpop.permute.xlu1 %365 }
  0x8d   : > { %v485_v35 = vpop.permute.xlu1 %484 }
  0x91   : > { %v600_v37 = vpop.permute.xlu1 %599 }
  0x92   : > { %v605_v38 = vsel %vm247_vm1, %v600_v37, 0 }
  0x95   : > { %v598_v39 = vpop.permute.xlu1 %597 }
  0xec   : > { %v288_v11 = vpop.f32.mrb[0].mxu0 }
  0xed   : > { %v294_v12 = vmul.f32 0.35355338, %v288_v11  ;;  %v859_v13 = vpop.f32.mrb[1].mxu0 }
  0xee   : > { %v291_v14 = vpop.f32.mrb[2].mxu0 }
  0xef   : > { %v860_v15 = vpop.f32.mrb[3].mxu0  ;;  %v301_v16 = vsel %vm300_vm3, %v294_v12, -1e+09  ;;  %v831_v12 = vcombine.low %v1029_v25, %v1029_v25 }
  0xf0   : > { %v302_v17 = vsel %vm247_vm1, %v301_v16, -inf }
  0xf1   : > { %303 = vmax.xlane.f32.xlu0 %v302_v17 }
 0x17e   : > { %v304_v20 = vpop.xlane.xlu0 %303 }
 0x17f   : > { %v305_v21 = vsub.f32 %v301_v16, %v304_v20 }
 0x181   : > { %v306_v22 = vmul.f32 1.442695, %v305_v21 }
 0x183   : > { %923 = vpow2.f32 %v306_v22 }
 0x18d   : > { %v924_v23 = vpop.eup %923 }
 0x18e   : > { %v308_v24 = vsel %vm247_vm1, %v924_v23, 0.0 }
 0x18f   : > { %309 = vadd.xlane.f32.xlu0 %v308_v24 }
 0x1a5   : > { %486 = vrot.lane.b32.xlu0 %v829_v18, %s951_s28 }
 0x21c   : > { %v310_v27 = vpop.xlane.xlu0 %309 }
 0x21d   : > { %925 = vrcp.f32 %v310_v27 }
 0x220   : > { %v487_v34 = vpop.permute.xlu0 %486 }
 0x221   : > { %v492_v36 = vsel %vm247_vm1, %v487_v34, 0 }
 0x227   : > { %v926_v28 = vpop.eup %925 }
 0x228   : > { %v312_v30 = vmul.f32 %v926_v28, %v924_v23 }
 0x22a   : > { %v313_v32 = vpack.c.bf16 %v312_v30, %v312_v30 }
 0x22c   : > { %864 = vmatmul.mubr.msk.bf16.vlgmr.msra.gmra.mrb[0].mxu1 %vm247_vm1, %v313_v32 }
 0x22d   : > { %868 = vmatpush3.bf16.xpose.msra.mxu1 %v376_v31  ;;  %869 = vmatprep.mubr.msk.bf16.mxu1 %vm948_vm0, %v947_v0 }
 0x22e   : > { %879 = vmatprep.subr.bf16.mxu1 %v947_v0 }
 0x234   : > { %870 = vmatmul.mubr.msk.bf16.vlgmr.msra.gmra.mrb[4].mxu1 %vm247_vm1, %v366_v33 }
 0x235   : > { %880 = vmatpush3.bf16.xpose.msra.mxu1 %v492_v36  ;;  %881 = vmatprep.mubr.msk.bf16.mxu1 %vm948_vm0, %v947_v0 }
 0x236   : > { %891 = vmatprep.subr.bf16.mxu1 %v947_v0 }
 0x23c   : > { %882 = vmatmul.mubr.msk.bf16.vlgmr.msra.gmra.mrb[8].mxu1 %vm247_vm1, %v485_v35 }
 0x23d   : > { %892 = vmatpush3.bf16.xpose.msra.mxu1 %v605_v38  ;;  %893 = vmatprep.mubr.msk.bf16.mxu1 %vm948_vm0, %v947_v0 }
 0x244   : > { %894 = vmatmul.mubr.msk.bf16.vlgmr.msra.gmra.mrb[12].mxu1 %vm247_vm1, %v598_v39 }
 0x2ff   : > { %v1050_v40 = vpop.f32.mrb[0].mxu1 }
 0x300   : > { %v865_v41 = vpop.f32.mrb[1].mxu1 }
 0x301   : > { %v358_v42 = vpop.f32.mrb[2].mxu1 }
 0x302   : > { %v866_v43 = vpop.f32.mrb[3].mxu1 }
 0x307   : > { %v412_v44 = vpop.f32.mrb[4].mxu1 }
 0x308   : > { %v418_v45 = vmul.f32 0.35355338, %v412_v44  ;;  %v871_v46 = vpop.f32.mrb[5].mxu1 }
 0x309   : > { %v415_v47 = vpop.f32.mrb[6].mxu1 }
 0x30a   : > { %v872_v48 = vpop.f32.mrb[7].mxu1  ;;  %v419_v49 = vsel %vm300_vm3, %v418_v45, -1e+09 }
 0x30b   : > { %v420_v50 = vsel %vm247_vm1, %v419_v49, -inf }
 0x30c   : > { %421 = vmax.xlane.f32.xlu1 %v420_v50 }
 0x30f   : > { %v528_v51 = vpop.f32.mrb[8].mxu1 }
 0x310   : > { %v534_v52 = vmul.f32 0.35355338, %v528_v51  ;;  %v883_v53 = vpop.f32.mrb[9].mxu1 }
 0x311   : > { %v531_v54 = vpop.f32.mrb[10].mxu1 }
 0x312   : > { %v535_v55 = vsel %vm300_vm3, %v534_v52, -1e+09  ;;  %v884_v56 = vpop.f32.mrb[11].mxu1  ;;  %v361_v52 = vpack.c.bf16 %v1050_v40, %v1050_v40 }
 0x313   : > { %v536_v57 = vsel %vm247_vm1, %v535_v55, -inf }
 0x314   : > { %537 = vmax.xlane.f32.xlu0 %v536_v57 }
 0x317   : > { %v641_v58 = vpop.f32.mrb[12].mxu1 }
 0x318   : > { %v647_v59 = vmul.f32 0.35355338, %v641_v58  ;;  %v895_v60 = vpop.f32.mrb[13].mxu1 }
 0x319   : > { %v644_v61 = vpop.f32.mrb[14].mxu1 }
 0x31a   : > { %v648_v62 = vsel %vm300_vm3, %v647_v59, -1e+09  ;;  %v896_v63 = vpop.f32.mrb[15].mxu1 }
 0x31b   : > { %v649_v1 = vsel %vm247_vm1, %v648_v62, -inf }
 0x31c   : > { %650 = vmax.xlane.f32.xlu1 %v649_v1 }
 0x399   : > { %v422_v2 = vpop.xlane.xlu1 %421 }
 0x39a   : > { %v423_v3 = vsub.f32 %v419_v49, %v422_v2 }
 0x39c   : > { %v424_v4 = vmul.f32 1.442695, %v423_v3 }
 0x39e   : > { %927 = vpow2.f32 %v424_v4 }
 0x3a1   : > { %v538_v5 = vpop.xlane.xlu0 %537 }
 0x3a2   : > { %v539_v6 = vsub.f32 %v535_v55, %v538_v5 }
 0x3a4   : > { %v540_v7 = vmul.f32 1.442695, %v539_v6 }
 0x3a6   : > { %929 = vpow2.f32 %v540_v7 }
 0x3a8   : > { %v928_v8 = vpop.eup %927 }
 0x3a9   : > { %v426_v9 = vsel %vm247_vm1, %v928_v8, 0.0  ;;  %v651_v13 = vpop.xlane.xlu1 %650 }
 0x3aa   : > { %427 = vadd.xlane.f32.xlu1 %v426_v9  ;;  %v652_v14 = vsub.f32 %v648_v62, %v651_v13 }
 0x3ac   : > { %v653_v15 = vmul.f32 1.442695, %v652_v14 }
 0x3ae   : > { %931 = vpow2.f32 %v653_v15 }
 0x3b0   : > { %v930_v11 = vpop.eup %929 }
 0x3b1   : > { %v542_v10 = vsel %vm247_vm1, %v930_v11, 0.0 }
 0x3b2   : > { %543 = vadd.xlane.f32.xlu0 %v542_v10 }
 0x3b8   : > { %v932_v16 = vpop.eup %931 }
 0x3b9   : > { %v655_v17 = vsel %vm247_vm1, %v932_v16, 0.0 }
 0x3bb   : > { %548 = vrot.lane.b32.xlu1 %v831_v12, %s951_s28 }
 0x3c8   : > { %435 = vrot.lane.b32.xlu0 %v831_v12, %s950_s27 }
 0x3df   : > { %656 = vadd.xlane.f32.xlu1 %v655_v17 }
 0x3f0   : > { %661 = vrot.lane.b32.xlu1 %v831_v12, %s952_s29 }
 0x437   : > { %v428_v18 = vpop.xlane.xlu1 %427 }
 0x438   : > { %933 = vrcp.f32 %v428_v18 }
 0x43b   : > { %v549_v24 = vpop.permute.xlu1 %548 }
 0x43c   : > { %v554_v26 = vsel %vm317_vm4, %v549_v24, 0 }
 0x43f   : > { %v544_v19 = vpop.xlane.xlu0 %543 }
 0x440   : > { %935 = vrcp.f32 %v544_v19 }
 0x442   : > { %v934_v20 = vpop.eup %933 }
 0x443   : > { %v430_v21 = vmul.f32 %v934_v20, %v928_v8  ;;  %v436_v22 = vpop.permute.xlu0 %435 }
 0x444   : > { %v441_v23 = vsel %vm317_vm4, %v436_v22, 0 }
 0x445   : > { %874 = vmatpush3.bf16.msra.mxu0 %v441_v23  ;;  %v431_v25 = vpack.c.bf16 %v430_v21, %v430_v21 }
 0x446   : > { %885 = vmatprep.subr.bf16.mxu0 %v947_v0 }
 0x448   : > { %876 = vmatmul.mubr.msk.bf16.vlgmr.msra.gmra.mrb[4].mxu0 %vm247_vm1, %v431_v25 }
 0x449   : > { %886 = vmatpush3.bf16.msra.mxu0 %v554_v26  ;;  %887 = vmatprep.mubr.msk.bf16.mxu0 %vm948_vm0, %v947_v0 }
 0x44a   : > { %v936_v27 = vpop.eup %935  ;;  %897 = vmatprep.subr.bf16.mxu0 %v947_v0 }
 0x44b   : > { %v546_v28 = vmul.f32 %v936_v27, %v930_v11 }
 0x44d   : > { %v547_v29 = vpack.c.bf16 %v546_v28, %v546_v28 }
 0x450   : > { %888 = vmatmul.mubr.msk.bf16.vlgmr.msra.gmra.mrb[8].mxu0 %vm247_vm1, %v547_v29 }
 0x451   : > { %899 = vmatprep.mubr.msk.bf16.mxu0 %vm948_vm0, %v947_v0 }
 0x46c   : > { %v657_v30 = vpop.xlane.xlu1 %656 }
 0x46d   : > { %937 = vrcp.f32 %v657_v30 }
 0x470   : > { %v662_v31 = vpop.permute.xlu1 %661 }
 0x471   : > { %v667_v32 = vsel %vm317_vm4, %v662_v31, 0 }
 0x472   : > { %898 = vmatpush3.bf16.msra.mxu0 %v667_v32 }
 0x477   : > { %v938_v33 = vpop.eup %937 }
 0x478   : > { %v659_v34 = vmul.f32 %v938_v33, %v932_v16 }
 0x47a   : > { %v660_v35 = vpack.c.bf16 %v659_v34, %v659_v34 }
 0x47c   : > { %900 = vmatmul.mubr.msk.bf16.vlgmr.msra.gmra.mrb[12].mxu0 %vm247_vm1, %v660_v35 }
 0x51b   : > { %v477_v36 = vpop.f32.mrb[4].mxu0 }
 0x51c   : > { %v483_v37 = vpack.c.bf16 %v477_v36, %v477_v36  ;;  %v877_v38 = vpop.f32.mrb[5].mxu0 }
 0x51d   : > { %v480_v39 = vpop.f32.mrb[6].mxu0 }
 0x51e   : > { %711 = vrot.lane.b32.xlu0 %v483_v37, %s953_s7  ;;  %v878_v41 = vpop.f32.mrb[7].mxu0 }
 0x523   : > { %v590_v42 = vpop.f32.mrb[8].mxu0 }
 0x524   : > { %v596_v0 = vpack.c.bf16 %v590_v42, %v590_v42  ;;  %v889_v43 = vpop.f32.mrb[9].mxu0 }
 0x525   : > { %v593_v44 = vpop.f32.mrb[10].mxu0 }
 0x526   : > { %714 = vrot.lane.b32.xlu1 %v596_v0, %s954_s8  ;;  %v890_v45 = vpop.f32.mrb[11].mxu0 }
 0x54f   : > { %v703_v46 = vpop.f32.mrb[12].mxu0 }
 0x550   : > { %v709_v47 = vpack.c.bf16 %v703_v46, %v703_v46  ;;  %v901_v48 = vpop.f32.mrb[13].mxu0 }
 0x551   : > { %v706_v49 = vpop.f32.mrb[14].mxu0 }
 0x552   : > { %717 = vrot.lane.b32.xlu0 %v709_v47, %s955_s9  ;;  %v902_v50 = vpop.f32.mrb[15].mxu0 }
 0x590   : > { %v712_v51 = vpop.permute.xlu0 %711 }
 0x591   : > { %v721_v54 = vsel %vm247_vm1, %v361_v52, %v712_v51 }
 0x598   : > { %v715_v53 = vpop.permute.xlu1 %714 }
 0x599   : > { %v724_v55 = vsel %vm722_vm5, %v721_v54, %v715_v53 }
 0x5c4   : > { %v718_v56 = vpop.permute.xlu0 %717 }
 0x5c5   : > { %v727_v57 = vsel %vm725_vm6, %v724_v55, %v718_v56 }
 0x5c6   : > { %730 = vst.msk [vmem:[%s240_s12] sm:$0xf] %vm729_vm7, %v727_v57 }
 0x5c7 PF: > { %s14_s15 = sadd.s32 1, %s945_s15  }
 0x5c8   : > { %p11_p4 = scmp.ge.s32.totalorder %s14_s15, 4  }
 0x5ca   :  { %13 = sbr.rel (!%p11_p4) target bundleno = 1 (0x1), region = 75 }

// kernel: _lambda_.30
= control target key start
LH: loop header
LB: loop body
LE: loop exit
PB: predicated region body
PF: predicated region fallthrough
CT: control target
= control target key end

     0   :  { %v187_v0 = vmov 0.0   ;;  %vm188_vm0 = vmmov 0   ;;  %vm48_vm1 = vcmask 261120   ;;  %vm146_vm2 = vcmask 257024   ;;  %s248_s1 = inlined_call_operand.vmem [shape: bf16[32,32], index: 1, kind: input, shape index: {}]   ;;  %s249_s0 = inlined_call_operand.vmem [shape: bf16[16,32], index: 0, kind: input, shape index: {}]   ;;  %s250_s2 = inlined_call_operand.vmem [shape: bf16[16,32], index: 2, kind: input, shape index: {}]   ;;  %s251_s3 = inlined_call_operand.vmem [shape: f32[1,32], index: 3, kind: input, shape index: {}]   ;;  %s252_s4 = inlined_call_operand.vmem [shape: f32[1,32], index: 4, kind: input, shape index: {}]   ;;  %s253_s5 = inlined_call_operand.vmem [shape: bf16[16,32], index: 5, kind: output, shape index: {}]  }
   0x1   :  { %170 = vmatprep.subr.bf16.mxu0 %v187_v0  ;;  %v180_v1 = vld [vmem:[%s248_s1] sm:$0xff]   ;;  %174 = vmatprep.mubr.msk.bf16.mxu0 %vm188_vm0, %v187_v0  ;;  %v181_v2 = vld [vmem:[%s248_s1 + $0x8] sm:$0xff]  }
   0x2   :  { %171 = vmatpush3.bf16.msra.mxu0 %v180_v1  ;;  %v182_v3 = vld [vmem:[%s249_s0] sm:$0xff]  }
   0x3   :  { %172 = vmatprep.subr.bf16.mxu0 %v187_v0  ;;  %v164_v4 = vld [vmem:[%s250_s2] sm:$0xff]  }
   0x4   :  { %v165_v5 = vunpack.c.l.bf16 %v164_v4  ;;  %v166_v6 = vunpack.c.h.bf16 %v164_v4  ;;  %v157_v32 = vld [vmem:[%s251_s3] ss:$0 sm:$0xff] }
   0x5   :  { %v158_v34 = vld [vmem:[%s252_s4] ss:$0 sm:$0xff] }
   0x6   :  { %173 = vmatpush3.bf16.msra.mxu0 %v181_v2 }
   0x9   :  { %175 = vmatmul.mubr.msk.bf16.vlgmr.msra.gmra.mrb[0].mxu0 %vm48_vm1, %v182_v3 }
  0xdc   :  { %v86_v7 = vpop.f32.mrb[0].mxu0 }
  0xdd   :  { %v87_v8 = vadd.f32 %v165_v5, %v86_v7  ;;  %v176_v9 = vpop.f32.mrb[1].mxu0 }
  0xde   :  { %v89_v10 = vpop.f32.mrb[2].mxu0 }
  0xdf   :  { %v90_v11 = vadd.f32 %v166_v6, %v89_v10  ;;  %v177_v12 = vpop.f32.mrb[3].mxu0  ;;  %v93_v13 = vsel %vm48_vm1, %v87_v8, 0.0 }
  0xe0   :  { %94 = vadd.xlane.f32.xlu0 %v93_v13 }
  0xe1   :  { %v96_v14 = vsel %vm48_vm1, %v90_v11, 0.0 }
  0xe4   :  { %97 = vadd.xlane.f32.xlu0 %v96_v14 }
 0x16d   :  { %v95_v15 = vpop.xlane.xlu0 %94 }
 0x16e   :  { %v100_v16 = vmul.f32 0.03125, %v95_v15 }
 0x170   :  { %v102_v17 = vsub.f32 %v87_v8, %v100_v16 }
 0x171   :  { %v98_v18 = vpop.xlane.xlu0 %97 }
 0x172   :  { %v101_v19 = vmul.f32 0.03125, %v98_v18  ;;  %v104_v20 = vmul.f32 %v102_v17, %v102_v17 }
 0x174   :  { %v103_v21 = vsub.f32 %v90_v11, %v101_v19  ;;  %v106_v22 = vsel %vm48_vm1, %v104_v20, 0.0 }
 0x175   :  { %107 = vadd.xlane.f32.xlu1 %v106_v22 }
 0x176   :  { %v105_v23 = vmul.f32 %v103_v21, %v103_v21 }
 0x178   :  { %v109_v24 = vsel %vm48_vm1, %v105_v23, 0.0 }
 0x179   :  { %110 = vadd.xlane.f32.xlu1 %v109_v24 }
 0x202   :  { %v108_v25 = vpop.xlane.xlu1 %107 }
 0x203   :  { %v112_v26 = vmul.f32 0.03125, %v108_v25 }
 0x205   :  { %v114_v27 = vadd.f32 1e-06, %v112_v26 }
 0x206   :  { %v111_v28 = vpop.xlane.xlu1 %110 }
 0x207   :  { %183 = vrsqrt.f32 %v114_v27  ;;  %v113_v29 = vmul.f32 0.03125, %v111_v28 }
 0x209   :  { %v115_v30 = vadd.f32 1e-06, %v113_v29 }
 0x20b   :  { %185 = vrsqrt.f32 %v115_v30 }
 0x211   :  { %v184_v31 = vpop.eup %183 }
 0x212   :  { %v118_v33 = vmul.f32 %v184_v31, %v102_v17 }
 0x214   :  { %v127_v35 = vmul.f32 %v157_v32, %v118_v33 }
 0x215   :  { %v186_v36 = vpop.eup %185 }
 0x216   :  { %v136_v37 = vadd.f32 %v158_v34, %v127_v35  ;;  %v119_v38 = vmul.f32 %v186_v36, %v103_v21 }
 0x218   :  { %v161_v39 = vpack.c.bf16 %v136_v37, %v136_v37  ;;  %v128_v40 = vmul.f32 %v157_v32, %v119_v38 }
 0x21a   :  { %147 = vst.msk [vmem:[%s253_s5] sm:$0xf] %vm146_vm2, %v161_v39  ;;  %v137_v41 = vadd.f32 %v158_v34, %v128_v40 }
 0x21c   :  { %v162_v42 = vpack.c.bf16 %v137_v41, %v137_v41 }
 0x21e   :  { %148 = vst.msk [vmem:[%s253_s5 + $0x4] sm:$0xf] %vm146_vm2, %v162_v42 }

// kernel: _lambda_.40
= control target key start
LH: loop header
LB: loop body
LE: loop exit
PB: predicated region body
PF: predicated region fallthrough
CT: control target
= control target key end

     0   :  { %v119_v0 = vmov 0.0   ;;  %vm120_vm0 = vmmov 0   ;;  %vm35_vm1 = vcmask 261120   ;;  %vm88_vm2 = vcmask 257024   ;;  %s151_s1 = inlined_call_operand.vmem [shape: bf16[32,32], index: 1, kind: input, shape index: {}]   ;;  %s152_s0 = inlined_call_operand.vmem [shape: bf16[16,32], index: 0, kind: input, shape index: {}]   ;;  %s153_s2 = inlined_call_operand.vmem [shape: bf16[16,32], index: 2, kind: output, shape index: {}]  }
   0x1   :  { %106 = vmatprep.subr.bf16.mxu0 %v119_v0  ;;  %v116_v1 = vld [vmem:[%s151_s1] sm:$0xff]   ;;  %110 = vmatprep.mubr.msk.bf16.mxu0 %vm120_vm0, %v119_v0  ;;  %v117_v2 = vld [vmem:[%s151_s1 + $0x8] sm:$0xff]  }
   0x2   :  { %107 = vmatpush3.bf16.msra.mxu0 %v116_v1  ;;  %v118_v3 = vld [vmem:[%s152_s0] sm:$0xff]  }
   0x3   :  { %108 = vmatprep.subr.bf16.mxu0 %v119_v0 }
   0x6   :  { %109 = vmatpush3.bf16.msra.mxu0 %v117_v2 }
   0x9   :  { %111 = vmatmul.mubr.msk.bf16.vlgmr.msra.gmra.mrb[0].mxu0 %vm35_vm1, %v118_v3 }
  0xdc   :  { %v73_v4 = vpop.f32.mrb[0].mxu0 }
  0xdd   :  { %v101_v5 = vpack.c.bf16 %v73_v4, %v73_v4  ;;  %v112_v6 = vpop.f32.mrb[1].mxu0 }
  0xde   :  { %v76_v7 = vpop.f32.mrb[2].mxu0 }
  0xdf   :  { %89 = vst.msk [vmem:[%s153_s2] sm:$0xf] %vm88_vm2, %v101_v5  ;;  %v102_v8 = vpack.c.bf16 %v76_v7, %v76_v7  ;;  %v113_v9 = vpop.f32.mrb[3].mxu0 }
  0xe1   :  { %90 = vst.msk [vmem:[%s153_s2 + $0x4] sm:$0xf] %vm88_vm2, %v102_v8 }

// kernel: _lambda_.31
= control target key start
LH: loop header
LB: loop body
LE: loop exit
PB: predicated region body
PF: predicated region fallthrough
CT: control target
= control target key end

     0   :  { %v312_v0 = vmov 0.0   ;;  %vm313_vm0 = vmmov 0   ;;  %vm57_vm1 = vcmask 261120   ;;  %vm144_vm2 = vcmask 523264   ;;  %s398_s1 = inlined_call_operand.vmem [shape: bf16[32,64], index: 1, kind: input, shape index: {}]   ;;  %s399_s0 = inlined_call_operand.vmem [shape: bf16[16,32], index: 0, kind: input, shape index: {}]   ;;  %s400_s3 = inlined_call_operand.vmem [shape: bf16[64,32], index: 3, kind: input, shape index: {}]   ;;  %s401_s2 = inlined_call_operand.vmem [shape: f32[1,64], index: 2, kind: input, shape index: {}]   ;;  %s402_s4 = inlined_call_operand.vmem [shape: f32[1,32], index: 4, kind: input, shape index: {}]   ;;  %s403_s5 = inlined_call_operand.vmem [shape: f32[1,32], index: 5, kind: input, shape index: {}]   ;;  %s404_s6 = inlined_call_operand.vmem [shape: f32[1,32], index: 6, kind: input, shape index: {}]   ;;  %s405_s7 = inlined_call_operand.vmem [shape: bf16[16,32], index: 7, kind: output, shape index: {}]  }
   0x1   :  { %278 = vmatprep.subr.bf16.mxu0 %v312_v0  ;;  %v300_v1 = vld [vmem:[%s398_s1] sm:$0xff]   ;;  %282 = vmatprep.mubr.msk.bf16.mxu0 %vm313_vm0, %v312_v0  ;;  %v301_v2 = vld [vmem:[%s398_s1 + $0x8] sm:$0xff]   ;;  %v305_v6 = vld [vmem:[%s400_s3 + $0x10] sm:$0xff]   ;;  %vm246_vm3 = vcmask 257024  }
   0x2   :  { %286 = vmatprep.subr.bf16.mxu1 %v312_v0  ;;  %294 = vmatprep.mubr.msk.bf16.mxu1 %vm313_vm0, %v312_v0  ;;  %v27_v3 = vld [vmem:[%s399_s0] sm:$0xff]   ;;  %v304_v5 = vld [vmem:[%s400_s3 + $0x8] sm:$0xff]   ;;  %v306_v7 = vld [vmem:[%s400_s3 + $0x18] sm:$0xff]  }
   0x3   :  { %279 = vmatpush3.bf16.msra.mxu0 %v300_v1  ;;  %v303_v4 = vld [vmem:[%s400_s3] sm:$0xff]   ;;  %v189_v19 = vunpack.c.l.bf16 %v27_v3  ;;  %v190_v23 = vunpack.c.h.bf16 %v27_v3 }
   0x4   :  { %280 = vmatprep.subr.bf16.mxu0 %v312_v0  ;;  %287 = vmatpush3.bf16.msra.mxu1 %v303_v4  ;;  %v253_v8 = vld [vmem:[%s401_s2] ss:$0 sm:$0xff] }
   0x5   :  { %288 = vmatprep.subr.bf16.mxu1 %v312_v0  ;;  %v258_v18 = vld [vmem:[%s402_s4] ss:$0 sm:$0xff] }
   0x6   :  { %v264_v48 = vld [vmem:[%s403_s5] ss:$0 sm:$0xff] }
   0x7   :  { %281 = vmatpush3.bf16.msra.mxu0 %v301_v2  ;;  %v265_v50 = vld [vmem:[%s404_s6] ss:$0 sm:$0xff] }
   0x8   :  { %289 = vmatpush3.bf16.msra.mxu1 %v304_v5 }
   0x9   :  { %290 = vmatprep.subr.bf16.mxu1 %v312_v0 }
   0xa   :  { %283 = vmatmul.mubr.msk.bf16.vlgmr.msra.gmra.mrb[0].mxu0 %vm57_vm1, %v27_v3 }
   0xc   :  { %291 = vmatpush3.bf16.msra.mxu1 %v305_v6 }
   0xd   :  { %292 = vmatprep.subr.bf16.mxu1 %v312_v0 }
  0x10   :  { %293 = vmatpush3.bf16.msra.mxu1 %v306_v7 }
  0xdd   :  { %v95_v9 = vpop.f32.mrb[0].mxu0 }
  0xde   :  { %v96_v10 = vadd.f32 %v253_v8, %v95_v9  ;;  %v284_v11 = vpop.f32.mrb[1].mxu0 }
  0xdf   :  { %v98_v12 = vpop.f32.mrb[2].mxu0 }
  0xe0   :  { %v99_v13 = vadd.f32 %v253_v8, %v98_v12  ;;  %v285_v14 = vpop.f32.mrb[3].mxu0  ;;  %v102_v15 = vmax.f32 %v96_v10, 0.0 }
  0xe2   :  { %v103_v16 = vmax.f32 %v99_v13, 0.0 }
  0xe4   :  { %v104_v17 = vpack.c.bf16 %v103_v16, %v102_v15 }
  0xe6   :  { %295 = vmatmul.mubr.msk.bf16.vlgmr.msra.gmra.mrb[0].mxu1 %vm144_vm2, %v104_v17 }
 0x1b9   :  { %v182_v20 = vpop.f32.mrb[0].mxu1 }
 0x1ba   :  { %v183_v21 = vadd.f32 %v258_v18, %v182_v20  ;;  %v296_v22 = vpop.f32.mrb[1].mxu1 }
 0x1bb   :  { %v185_v24 = vpop.f32.mrb[2].mxu1 }
 0x1bc   :  { %v186_v25 = vadd.f32 %v258_v18, %v185_v24  ;;  %v297_v26 = vpop.f32.mrb[3].mxu1  ;;  %v191_v27 = vadd.f32 %v189_v19, %v183_v21 }
 0x1be   :  { %v193_v28 = vsel %vm57_vm1, %v191_v27, 0.0  ;;  %v192_v29 = vadd.f32 %v190_v23, %v186_v25 }
 0x1bf   :  { %194 = vadd.xlane.f32.xlu0 %v193_v28 }
 0x1c0   :  { %v196_v30 = vsel %vm57_vm1, %v192_v29, 0.0 }
 0x1c3   :  { %197 = vadd.xlane.f32.xlu0 %v196_v30 }
 0x24c   :  { %v195_v31 = vpop.xlane.xlu0 %194 }
 0x24d   :  { %v200_v32 = vmul.f32 0.03125, %v195_v31 }
 0x24f   :  { %v202_v33 = vsub.f32 %v191_v27, %v200_v32 }
 0x250   :  { %v198_v34 = vpop.xlane.xlu0 %197 }
 0x251   :  { %v201_v35 = vmul.f32 0.03125, %v198_v34  ;;  %v204_v36 = vmul.f32 %v202_v33, %v202_v33 }
 0x253   :  { %v203_v37 = vsub.f32 %v192_v29, %v201_v35  ;;  %v206_v38 = vsel %vm57_vm1, %v204_v36, 0.0 }
 0x254   :  { %207 = vadd.xlane.f32.xlu1 %v206_v38 }
 0x255   :  { %v205_v39 = vmul.f32 %v203_v37, %v203_v37 }
 0x257   :  { %v209_v40 = vsel %vm57_vm1, %v205_v39, 0.0 }
 0x258   :  { %210 = vadd.xlane.f32.xlu1 %v209_v40 }
 0x2e1   :  { %v208_v41 = vpop.xlane.xlu1 %207 }
 0x2e2   :  { %v212_v42 = vmul.f32 0.03125, %v208_v41 }
 0x2e4   :  { %v214_v43 = vadd.f32 1e-06, %v212_v42 }
 0x2e5   :  { %v211_v44 = vpop.xlane.xlu1 %210 }
 0x2e6   :  { %308 = vrsqrt.f32 %v214_v43  ;;  %v213_v45 = vmul.f32 0.03125, %v211_v44 }
 0x2e8   :  { %v215_v46 = vadd.f32 1e-06, %v213_v45 }
 0x2ea   :  { %310 = vrsqrt.f32 %v215_v46 }
 0x2f0   :  { %v309_v47 = vpop.eup %308 }
 0x2f1   :  { %v218_v49 = vmul.f32 %v309_v47, %v202_v33 }
 0x2f3   :  { %v227_v51 = vmul.f32 %v264_v48, %v218_v49 }
 0x2f4   :  { %v311_v52 = vpop.eup %310 }
 0x2f5   :  { %v236_v53 = vadd.f32 %v265_v50, %v227_v51  ;;  %v219_v54 = vmul.f32 %v311_v52, %v203_v37 }
 0x2f7   :  { %v268_v55 = vpack.c.bf16 %v236_v53, %v236_v53  ;;  %v228_v56 = vmul.f32 %v264_v48, %v219_v54 }
 0x2f9   :  { %247 = vst.msk [vmem:[%s405_s7] sm:$0xf] %vm246_vm3, %v268_v55  ;;  %v237_v57 = vadd.f32 %v265_v50, %v228_v56 }
 0x2fb   :  { %v269_v58 = vpack.c.bf16 %v237_v57, %v237_v57 }
 0x2fd   :  { %248 = vst.msk [vmem:[%s405_s7 + $0x4] sm:$0xf] %vm246_vm3, %v269_v58 }

// kernel: _lambda_.41
= control target key start
LH: loop header
LB: loop body
LE: loop exit
PB: predicated region body
PF: predicated region fallthrough
CT: control target
= control target key end

     0   :  { %v215_v0 = vmov 0.0   ;;  %vm216_vm0 = vmmov 0   ;;  %vm40_vm1 = vcmask 261120   ;;  %vm93_vm2 = vcmask 257024   ;;  %s273_s1 = inlined_call_operand.vmem [shape: bf16[32,32], index: 1, kind: input, shape index: {}]   ;;  %s274_s2 = inlined_call_operand.vmem [shape: bf16[32,32], index: 2, kind: input, shape index: {}]   ;;  %s275_s0 = inlined_call_operand.vmem [shape: bf16[16,32], index: 0, kind: input, shape index: {}]   ;;  %s276_s3 = inlined_call_operand.vmem [shape: bf16[16,32], index: 3, kind: output, shape index: {0}]   ;;  %s277_s4 = inlined_call_operand.vmem [shape: bf16[16,32], index: 4, kind: output, shape index: {1}]  }
   0x1   :  { %192 = vmatprep.subr.bf16.mxu0 %v215_v0  ;;  %200 = vmatprep.subr.bf16.mxu1 %v215_v0  ;;  %v210_v1 = vld [vmem:[%s273_s1] sm:$0xff]   ;;  %v212_v3 = vld [vmem:[%s273_s1 + $0x8] sm:$0xff]  }
   0x2   :  { %v211_v2 = vld [vmem:[%s274_s2] sm:$0xff]   ;;  %196 = vmatprep.mubr.msk.bf16.mxu0 %vm216_vm0, %v215_v0  ;;  %204 = vmatprep.mubr.msk.bf16.mxu1 %vm216_vm0, %v215_v0  ;;  %v213_v4 = vld [vmem:[%s274_s2 + $0x8] sm:$0xff]  }
   0x3   :  { %193 = vmatpush3.bf16.msra.mxu0 %v210_v1  ;;  %201 = vmatpush3.bf16.msra.mxu1 %v211_v2  ;;  %v214_v5 = vld [vmem:[%s275_s0] sm:$0xff]  }
   0x4   :  { %194 = vmatprep.subr.bf16.mxu0 %v215_v0  ;;  %202 = vmatprep.subr.bf16.mxu1 %v215_v0 }
   0x7   :  { %195 = vmatpush3.bf16.msra.mxu0 %v212_v3  ;;  %203 = vmatpush3.bf16.msra.mxu1 %v213_v4 }
   0xa   :  { %197 = vmatmul.mubr.msk.bf16.vlgmr.msra.gmra.mrb[0].mxu0 %vm40_vm1, %v214_v5  ;;  %205 = vmatmul.mubr.msk.bf16.vlgmr.msra.gmra.mrb[0].mxu1 %vm40_vm1, %v214_v5 }
  0xdd   :  { %v78_v6 = vpop.f32.mrb[0].mxu0  ;;  %v146_v8 = vpop.f32.mrb[0].mxu1 }
  0xde   :  { %v182_v7 = vpack.c.bf16 %v78_v6, %v78_v6  ;;  %v198_v9 = vpop.f32.mrb[1].mxu0  ;;  %v184_v10 = vpack.c.bf16 %v146_v8, %v146_v8  ;;  %v206_v11 = vpop.f32.mrb[1].mxu1 }
  0xdf   :  { %v81_v12 = vpop.f32.mrb[2].mxu0  ;;  %v149_v14 = vpop.f32.mrb[2].mxu1 }
  0xe0   :  { %94 = vst.msk [vmem:[%s276_s3] sm:$0xf] %vm93_vm2, %v182_v7  ;;  %v183_v13 = vpack.c.bf16 %v81_v12, %v81_v12  ;;  %v199_v15 = vpop.f32.mrb[3].mxu0  ;;  %161 = vst.msk [vmem:[%s277_s4] sm:$0xf] %vm93_vm2, %v184_v10  ;;  %v185_v16 = vpack.c.bf16 %v149_v14, %v149_v14  ;;  %v207_v17 = vpop.f32.mrb[3].mxu1 }
  0xe2   :  { %95 = vst.msk [vmem:[%s276_s3 + $0x4] sm:$0xf] %vm93_vm2, %v183_v13  ;;  %162 = vst.msk [vmem:[%s277_s4 + $0x4] sm:$0xf] %vm93_vm2, %v185_v16 }

// kernel: _lambda_.53
= control target key start
LH: loop header
LB: loop body
LE: loop exit
PB: predicated region body
PF: predicated region fallthrough
CT: control target
= control target key end

     0   :  { %v138_v1 = vmov 0.0   ;;  %vm27_vm0 = vcmask 261120   ;;  %vm139_vm1 = vmmov 0   ;;  %s176_s0 = inlined_call_operand.vmem [shape: bf16[16,32], index: 0, kind: input, shape index: {}]   ;;  %s177_s1 = inlined_call_operand.vmem [shape: bf16[16,32], index: 1, kind: input, shape index: {}]   ;;  %s178_s2 = inlined_call_operand.hbm [shape: f32[16,16], index: 2, kind: output, shape index: {}]  }
   0x1   :  { %v112_v0 = vld [vmem:[%s177_s1] sm:$0xff]   ;;  %101 = vmatprep.subr.bf16.mxu0 %v138_v1  ;;  %103 = vmatprep.mubr.msk.bf16.mxu0 %vm139_vm1, %v138_v1 }
   0x2   :  { %v32_v2 = vsel %vm27_vm0, %v112_v0, 0 }
   0x3   :  { %7 = vsyncpa [#allocation3], 0  ;;  %102 = vmatpush3.bf16.xpose.msra.mxu0 %v32_v2  ;;  %v113_v3 = vld [vmem:[%s176_s0] sm:$0xff]   ;;  %s140_s13 = smov [#allocation2]   ;;  %vm77_vm2 = vcmask 130048  }
   0x4   :  { %s85_s14 = sshll.u32 %s140_s13, 4  ;;  %s86_s14 = int_to_ptr.vmem [resolvable:$true] %s85_s14 }
   0x5   :  { %s114_s1 = scalar_lea.vmem %s86_s14, 256  ;;  %p119_p1 = scmp.lt.s32.totalorder %s86_s14, %s86_s14 }
   0x6   :  { %p115_p0 = scmp.ne.s32.totalorder %s86_s14, %s114_s1  ;;  %p120_p2 = scmp.lt.s32.totalorder %s114_s1, %s114_s1 }
   0x8   :  { %p121_p3 = por %p120_p2, %p119_p1 }
   0xa   :  { %104 = vmatmul.mubr.msk.bf16.vlgmr.msra.gmra.mrb[0].mxu0 %vm27_vm0, %v113_v3  ;;  %p122_p4 = pnand %p121_p3, %p115_p0 }
  0xdd   :  { %v68_v4 = vpop.f32.mrb[0].mxu0 }
  0xde   :  { %v75_v5 = vmul.f32 0.17677669, %v68_v4  ;;  %v105_v6 = vpop.f32.mrb[1].mxu0 }
  0xdf   :  { %v71_v7 = vpop.f32.mrb[2].mxu0 }
  0xe0   :  { %78 = vst.msk [vmem:[#allocation2] sm:$0xff] %vm77_vm2, %v75_v5  ;;  %v76_v8 = vmul.f32 0.17677669, %v71_v7  ;;  %v106_v9 = vpop.f32.mrb[3].mxu0 }
  0xe2   :  { %79 = vst.msk [vmem:[#allocation2 + $0x8] sm:$0xff] %vm77_vm2, %v76_v8 }
  0xe3   :  { %125 = shalt.err (!%p122_p4)
}
  0xe4   :  { %s126_s16 = scalar_lea.hbm %s178_s2, 256 }
  0xe5   :  { %p127_p5 = scmp.ne.s32.totalorder %s178_s2, %s126_s16  ;;  %p130_p6 = scmp.lt.u32.totalorder %s126_s16, %s178_s2 }
  0xe7   :  { %p132_p7 = pnand %p130_p6, %p127_p5 }
  0xe9   :  { %135 = shalt.err (!%p132_p7)
}
  0xea   :  { %s141_s21 = smov 128   ;;  %s142_s22 = smov 8  }
  0xeb   :  { %91 = dma.vmem_to_hbm [thread:$0]  %s86_s14, 256, %s178_s2, [#allocation3], %s141_s21, %s141_s21, %s142_s22  }
  0xec   :  { %136 = dma.done.wait [#allocation3], 256  }
  0xed   :  { %137 = vsyncadd [#allocation3], 4294967040 }
  0xee   :  { %95 = vsyncpa [#allocation3], 1 }

// kernel: _lambda_.38
= control target key start
LH: loop header
LB: loop body
LE: loop exit
PB: predicated region body
PF: predicated region fallthrough
CT: control target
= control target key end

     0   :  { %s987_s15 = smov 0   ;;  %s1098_s0 = inlined_call_operand.vmem [shape: bf16[2,8,32], index: 0, kind: input, shape index: {}]   ;;  %s1099_s1 = inlined_call_operand.vmem [shape: bf16[2,8,32], index: 1, kind: input, shape index: {}]   ;;  %s1100_s2 = inlined_call_operand.vmem [shape: bf16[2,8,32], index: 2, kind: input, shape index: {}]   ;;  %s1101_s3 = inlined_call_operand.vmem [shape: s32[2,1,8], index: 3, kind: input, shape index: {}]   ;;  %s1102_s4 = inlined_call_operand.vmem [shape: bf16[2,8,32], index: 4, kind: output, shape index: {}]  }
   0x1 LB: > { %s823_s16 = sadd.s32 4294967295, %s951_s15   ;;  %p827_p0 = scmp.ge.s32.totalorder %s951_s15, 1  ;;  %s951_s15 = sphi %s987_s15, %s14_s15  }
   0x2   : > { %p187_p1 = scmp.lt.s32.totalorder %s951_s15, 3 }
   0x4   : > { %p188_p2 = pnand %p827_p0, %p187_p1 }
   0x5   : > { %p222_p3 = scmp.lt.s32.totalorder (!%p188_p2), %s823_s16, 1  ;;  %v953_v0 = vmov (!%p188_p2), 0.0   ;;  %vm954_vm0 = vmmov (!%p188_p2), 0   ;;  %vm259_vm1 = vcmask (!%p188_p2), 64512   ;;  %v244_v4 = vlaneseq (!%p188_p2)  ;;  %s956_s27 = smov (!%p188_p2), 120  }
   0x6   : > { %191 = sbr.rel (%p188_p2) target bundleno = 1479 (0x5c7), region = 36  ;;  %861 = vmatprep.subr.bf16.mxu0 (!%p188_p2), %v953_v0  ;;  %863 = vmatprep.mubr.msk.bf16.mxu0 (!%p188_p2), %vm954_vm0, %v953_v0  ;;  %v955_v8 = vmov (!%p188_p2), 0   ;;  %s957_s28 = smov (!%p188_p2), 112   ;;  %vm323_vm6 = vcmask (!%p188_p2), 1043456   ;;  %vm728_vm7 = vcmask (!%p188_p2), 130048   ;;  %vm731_vm8 = vcmask (!%p188_p2), 195584  }
   0x7   : > { %867 = vmatprep.subr.bf16.mxu1 (!%p188_p2), %v953_v0  ;;  %869 = vmatprep.mubr.msk.bf16.mxu1 (!%p188_p2), %vm954_vm0, %v953_v0  ;;  %v245_v6 = vshrl.u32 (!%p188_p2), %v244_v4, 7  ;;  %v247_v10 = vand.u32 (!%p188_p2), 127, %v244_v4  ;;  %s958_s29 = smov (!%p188_p2), 104   ;;  %s959_s7 = smov (!%p188_p2), 8   ;;  %vm735_vm9 = vcmask (!%p188_p2), 257024  }
   0x8   : > { %s960_s8 = smov (!%p188_p2), 16   ;;  %s961_s9 = smov (!%p188_p2), 24  }
   0x9   : > { %v252_v7 = vsub.s32 (!%p188_p2), 0, %v245_v6  ;;  %vm248_vm3 = vcmp.le.s32.totalorder (!%p188_p2), %v247_v10, %v245_v6 }
   0xd   : > { %s1106_s16 = smov (!%p222_p3, %s823_s16), 1 }
   0xe   : > { %s1001_s17 = sshll.u32 %s1106_s16, 2  ;;  %s236_s26 = scalar_lea.vmem %s1101_s3, %s1106_s16 }
   0xf   : > { %s229_s20 = scalar_lea.vmem %s1099_s1, %s1001_s17  ;;  %s225_s23 = scalar_lea.vmem %s1098_s0, %s1001_s17  ;;  %v242_v5 = vld [vmem:[%s236_s26] sm:$0x1] }
  0x10   : > { %v257_v1 = vld [vmem:[%s229_s20] sm:$0xf]  ;;  %vm243_vm2 = vcmp.ne.s32.totalorder %v242_v5, 0  ;;  %s233_s6 = scalar_lea.vmem %s1100_s2, %s1001_s17  ;;  %s240_s12 = scalar_lea.vmem %s1102_s4, %s1001_s17 }
  0x11   : > { %v264_v2 = vsel %vm259_vm1, %v257_v1, 0  ;;  %v256_v3 = vld [vmem:[%s225_s23] sm:$0xf]  ;;  %v249_v9 = vsel %vm243_vm2, 1, %v955_v8  ;;  %v835_v20 = vcombine.low %v257_v1, %v257_v1 }
  0x12   : > { %862 = vmatpush3.bf16.xpose.msra.mxu0 %v264_v2  ;;  %v253_v11 = vrot.slane %v249_v9, %v252_v7  ;;  %v834_v21 = vcombine.low %v256_v3, %v256_v3  ;;  %v1036_v27 = vld [vmem:[%s233_s6] sm:$0xf] }
  0x13   : > { %879 = vmatprep.subr.bf16.mxu0 %v953_v0  ;;  %376 = vrot.lane.b32.xlu1 %v835_v20, %s956_s27  ;;  %v325_v28 = vsel %vm323_vm6, %v1036_v27, 0 }
  0x14   : > { %vm254_vm4 = vcmp.eq.s32.totalorder %v253_v11, 1  ;;  %868 = vmatpush3.bf16.msra.mxu1 %v325_v28 }
  0x15   : > { %vm1019_vm5 = vmand %vm254_vm4, %vm248_vm3  ;;  %873 = vmatprep.subr.bf16.mxu1 %v953_v0 }
  0x17   : > { %371 = vrot.lane.b32.xlu1 %v834_v21, %s956_s27 }
  0x19   : > { %864 = vmatmul.mubr.msk.bf16.vlgmr.msra.gmra.mrb[0].mxu0 %vm259_vm1, %v256_v3 }
  0x1a   : > { %881 = vmatprep.mubr.msk.bf16.mxu0 %vm954_vm0, %v953_v0 }
  0x1b   : > { %490 = vrot.lane.b32.xlu1 %v834_v21, %s957_s28 }
  0x1f   : > { %605 = vrot.lane.b32.xlu1 %v835_v20, %s958_s29 }
  0x23   : > { %603 = vrot.lane.b32.xlu1 %v834_v21, %s958_s29 }
  0x85   : > { %v377_v31 = vpop.permute.xlu1 %376 }
  0x86   : > { %v382_v33 = vsel %vm259_vm1, %v377_v31, 0 }
  0x89   : > { %v372_v35 = vpop.permute.xlu1 %371 }
  0x8d   : > { %v491_v37 = vpop.permute.xlu1 %490 }
  0x91   : > { %v606_v39 = vpop.permute.xlu1 %605 }
  0x92   : > { %v611_v40 = vsel %vm259_vm1, %v606_v39, 0 }
  0x95   : > { %v604_v41 = vpop.permute.xlu1 %603 }
  0xec   : > { %v300_v12 = vpop.f32.mrb[0].mxu0 }
  0xed   : > { %v306_v14 = vmul.f32 0.35355338, %v300_v12  ;;  %v865_v15 = vpop.f32.mrb[1].mxu0 }
  0xee   : > { %v303_v16 = vpop.f32.mrb[2].mxu0 }
  0xef   : > { %v866_v17 = vpop.f32.mrb[3].mxu0  ;;  %v307_v18 = vsel %vm1019_vm5, %v306_v14, -1e+09  ;;  %v837_v14 = vcombine.low %v1036_v27, %v1036_v27 }
  0xf0   : > { %v308_v19 = vsel %vm259_vm1, %v307_v18, -inf }
  0xf1   : > { %309 = vmax.xlane.f32.xlu0 %v308_v19 }
 0x17e   : > { %v310_v22 = vpop.xlane.xlu0 %309 }
 0x17f   : > { %v311_v23 = vsub.f32 %v307_v18, %v310_v22 }
 0x181   : > { %v312_v24 = vmul.f32 1.442695, %v311_v23 }
 0x183   : > { %929 = vpow2.f32 %v312_v24 }
 0x18d   : > { %v930_v25 = vpop.eup %929 }
 0x18e   : > { %v314_v26 = vsel %vm259_vm1, %v930_v25, 0.0 }
 0x18f   : > { %315 = vadd.xlane.f32.xlu0 %v314_v26 }
 0x1a5   : > { %492 = vrot.lane.b32.xlu0 %v835_v20, %s957_s28 }
 0x21c   : > { %v316_v29 = vpop.xlane.xlu0 %315 }
 0x21d   : > { %931 = vrcp.f32 %v316_v29 }
 0x220   : > { %v493_v36 = vpop.permute.xlu0 %492 }
 0x221   : > { %v498_v38 = vsel %vm259_vm1, %v493_v36, 0 }
 0x227   : > { %v932_v30 = vpop.eup %931 }
 0x228   : > { %v318_v32 = vmul.f32 %v932_v30, %v930_v25 }
 0x22a   : > { %v319_v34 = vpack.c.bf16 %v318_v32, %v318_v32 }
 0x22c   : > { %870 = vmatmul.mubr.msk.bf16.vlgmr.msra.gmra.mrb[0].mxu1 %vm259_vm1, %v319_v34 }
 0x22d   : > { %874 = vmatpush3.bf16.xpose.msra.mxu1 %v382_v33  ;;  %875 = vmatprep.mubr.msk.bf16.mxu1 %vm954_vm0, %v953_v0 }
 0x22e   : > { %885 = vmatprep.subr.bf16.mxu1 %v953_v0 }
 0x234   : > { %876 = vmatmul.mubr.msk.bf16.vlgmr.msra.gmra.mrb[4].mxu1 %vm259_vm1, %v372_v35 }
 0x235   : > { %886 = vmatpush3.bf16.xpose.msra.mxu1 %v498_v38  ;;  %887 = vmatprep.mubr.msk.bf16.mxu1 %vm954_vm0, %v953_v0 }
 0x236   : > { %897 = vmatprep.subr.bf16.mxu1 %v953_v0 }
 0x23c   : > { %888 = vmatmul.mubr.msk.bf16.vlgmr.msra.gmra.mrb[8].mxu1 %vm259_vm1, %v491_v37 }
 0x23d   : > { %898 = vmatpush3.bf16.xpose.msra.mxu1 %v611_v40  ;;  %899 = vmatprep.mubr.msk.bf16.mxu1 %vm954_vm0, %v953_v0 }
 0x244   : > { %900 = vmatmul.mubr.msk.bf16.vlgmr.msra.gmra.mrb[12].mxu1 %vm259_vm1, %v604_v41 }
 0x2ff   : > { %v1057_v42 = vpop.f32.mrb[0].mxu1 }
 0x300   : > { %v871_v43 = vpop.f32.mrb[1].mxu1 }
 0x301   : > { %v364_v44 = vpop.f32.mrb[2].mxu1 }
 0x302   : > { %v872_v45 = vpop.f32.mrb[3].mxu1 }
 0x307   : > { %v418_v46 = vpop.f32.mrb[4].mxu1 }
 0x308   : > { %v424_v47 = vmul.f32 0.35355338, %v418_v46  ;;  %v877_v48 = vpop.f32.mrb[5].mxu1 }
 0x309   : > { %v421_v49 = vpop.f32.mrb[6].mxu1 }
 0x30a   : > { %v878_v50 = vpop.f32.mrb[7].mxu1  ;;  %v425_v51 = vsel %vm1019_vm5, %v424_v47, -1e+09 }
 0x30b   : > { %v426_v52 = vsel %vm259_vm1, %v425_v51, -inf }
 0x30c   : > { %427 = vmax.xlane.f32.xlu1 %v426_v52 }
 0x30f   : > { %v534_v53 = vpop.f32.mrb[8].mxu1 }
 0x310   : > { %v540_v54 = vmul.f32 0.35355338, %v534_v53  ;;  %v889_v55 = vpop.f32.mrb[9].mxu1 }
 0x311   : > { %v537_v56 = vpop.f32.mrb[10].mxu1 }
 0x312   : > { %v541_v57 = vsel %vm1019_vm5, %v540_v54, -1e+09  ;;  %v890_v58 = vpop.f32.mrb[11].mxu1  ;;  %v367_v54 = vpack.c.bf16 %v1057_v42, %v1057_v42 }
 0x313   : > { %v542_v59 = vsel %vm259_vm1, %v541_v57, -inf }
 0x314   : > { %543 = vmax.xlane.f32.xlu0 %v542_v59 }
 0x317   : > { %v647_v60 = vpop.f32.mrb[12].mxu1 }
 0x318   : > { %v653_v61 = vmul.f32 0.35355338, %v647_v60  ;;  %v901_v62 = vpop.f32.mrb[13].mxu1 }
 0x319   : > { %v650_v63 = vpop.f32.mrb[14].mxu1 }
 0x31a   : > { %v654_v1 = vsel %vm1019_vm5, %v653_v61, -1e+09  ;;  %v902_v2 = vpop.f32.mrb[15].mxu1 }
 0x31b   : > { %v655_v3 = vsel %vm259_vm1, %v654_v1, -inf }
 0x31c   : > { %656 = vmax.xlane.f32.xlu1 %v655_v3 }
 0x399   : > { %v428_v4 = vpop.xlane.xlu1 %427 }
 0x39a   : > { %v429_v5 = vsub.f32 %v425_v51, %v428_v4 }
 0x39c   : > { %v430_v6 = vmul.f32 1.442695, %v429_v5 }
 0x39e   : > { %933 = vpow2.f32 %v430_v6 }
 0x3a1   : > { %v544_v7 = vpop.xlane.xlu0 %543 }
 0x3a2   : > { %v545_v8 = vsub.f32 %v541_v57, %v544_v7 }
 0x3a4   : > { %v546_v9 = vmul.f32 1.442695, %v545_v8 }
 0x3a6   : > { %935 = vpow2.f32 %v546_v9 }
 0x3a8   : > { %v934_v10 = vpop.eup %933 }
 0x3a9   : > { %v432_v11 = vsel %vm259_vm1, %v934_v10, 0.0  ;;  %v657_v15 = vpop.xlane.xlu1 %656 }
 0x3aa   : > { %433 = vadd.xlane.f32.xlu1 %v432_v11  ;;  %v658_v16 = vsub.f32 %v654_v1, %v657_v15 }
 0x3ac   : > { %v659_v17 = vmul.f32 1.442695, %v658_v16 }
 0x3ae   : > { %937 = vpow2.f32 %v659_v17 }
 0x3b0   : > { %v936_v12 = vpop.eup %935 }
 0x3b1   : > { %v548_v13 = vsel %vm259_vm1, %v936_v12, 0.0 }
 0x3b2   : > { %549 = vadd.xlane.f32.xlu0 %v548_v13 }
 0x3b8   : > { %v938_v18 = vpop.eup %937 }
 0x3b9   : > { %v661_v19 = vsel %vm259_vm1, %v938_v18, 0.0 }
 0x3bb   : > { %554 = vrot.lane.b32.xlu1 %v837_v14, %s957_s28 }
 0x3c8   : > { %441 = vrot.lane.b32.xlu0 %v837_v14, %s956_s27 }
 0x3df   : > { %662 = vadd.xlane.f32.xlu1 %v661_v19 }
 0x3f0   : > { %667 = vrot.lane.b32.xlu1 %v837_v14, %s958_s29 }
 0x437   : > { %v434_v20 = vpop.xlane.xlu1 %433 }
 0x438   : > { %939 = vrcp.f32 %v434_v20 }
 0x43b   : > { %v555_v26 = vpop.permute.xlu1 %554 }
 0x43c   : > { %v560_v28 = vsel %vm323_vm6, %v555_v26, 0 }
 0x43f   : > { %v550_v21 = vpop.xlane.xlu0 %549 }
 0x440   : > { %941 = vrcp.f32 %v550_v21 }
 0x442   : > { %v940_v22 = vpop.eup %939 }
 0x443   : > { %v436_v23 = vmul.f32 %v940_v22, %v934_v10  ;;  %v442_v24 = vpop.permute.xlu0 %441 }
 0x444   : > { %v447_v25 = vsel %vm323_vm6, %v442_v24, 0 }
 0x445   : > { %880 = vmatpush3.bf16.msra.mxu0 %v447_v25  ;;  %v437_v27 = vpack.c.bf16 %v436_v23, %v436_v23 }
 0x446   : > { %891 = vmatprep.subr.bf16.mxu0 %v953_v0 }
 0x448   : > { %882 = vmatmul.mubr.msk.bf16.vlgmr.msra.gmra.mrb[4].mxu0 %vm259_vm1, %v437_v27 }
 0x449   : > { %892 = vmatpush3.bf16.msra.mxu0 %v560_v28  ;;  %893 = vmatprep.mubr.msk.bf16.mxu0 %vm954_vm0, %v953_v0 }
 0x44a   : > { %v942_v29 = vpop.eup %941  ;;  %903 = vmatprep.subr.bf16.mxu0 %v953_v0 }
 0x44b   : > { %v552_v30 = vmul.f32 %v942_v29, %v936_v12 }
 0x44d   : > { %v553_v31 = vpack.c.bf16 %v552_v30, %v552_v30 }
 0x450   : > { %894 = vmatmul.mubr.msk.bf16.vlgmr.msra.gmra.mrb[8].mxu0 %vm259_vm1, %v553_v31 }
 0x451   : > { %905 = vmatprep.mubr.msk.bf16.mxu0 %vm954_vm0, %v953_v0 }
 0x46c   : > { %v663_v32 = vpop.xlane.xlu1 %662 }
 0x46d   : > { %943 = vrcp.f32 %v663_v32 }
 0x470   : > { %v668_v33 = vpop.permute.xlu1 %667 }
 0x471   : > { %v673_v34 = vsel %vm323_vm6, %v668_v33, 0 }
 0x472   : > { %904 = vmatpush3.bf16.msra.mxu0 %v673_v34 }
 0x477   : > { %v944_v35 = vpop.eup %943 }
 0x478   : > { %v665_v36 = vmul.f32 %v944_v35, %v938_v18 }
 0x47a   : > { %v666_v37 = vpack.c.bf16 %v665_v36, %v665_v36 }
 0x47c   : > { %906 = vmatmul.mubr.msk.bf16.vlgmr.msra.gmra.mrb[12].mxu0 %vm259_vm1, %v666_v37 }
 0x51b   : > { %v483_v38 = vpop.f32.mrb[4].mxu0 }
 0x51c   : > { %v489_v39 = vpack.c.bf16 %v483_v38, %v483_v38  ;;  %v883_v40 = vpop.f32.mrb[5].mxu0 }
 0x51d   : > { %v486_v41 = vpop.f32.mrb[6].mxu0 }
 0x51e   : > { %717 = vrot.lane.b32.xlu0 %v489_v39, %s959_s7  ;;  %v884_v43 = vpop.f32.mrb[7].mxu0 }
 0x523   : > { %v596_v44 = vpop.f32.mrb[8].mxu0 }
 0x524   : > { %v602_v0 = vpack.c.bf16 %v596_v44, %v596_v44  ;;  %v895_v45 = vpop.f32.mrb[9].mxu0 }
 0x525   : > { %v599_v46 = vpop.f32.mrb[10].mxu0 }
 0x526   : > { %720 = vrot.lane.b32.xlu1 %v602_v0, %s960_s8  ;;  %v896_v47 = vpop.f32.mrb[11].mxu0 }
 0x54f   : > { %v709_v48 = vpop.f32.mrb[12].mxu0 }
 0x550   : > { %v715_v49 = vpack.c.bf16 %v709_v48, %v709_v48  ;;  %v907_v50 = vpop.f32.mrb[13].mxu0 }
 0x551   : > { %v712_v51 = vpop.f32.mrb[14].mxu0 }
 0x552   : > { %723 = vrot.lane.b32.xlu0 %v715_v49, %s961_s9  ;;  %v908_v52 = vpop.f32.mrb[15].mxu0 }
 0x590   : > { %v718_v53 = vpop.permute.xlu0 %717 }
 0x591   : > { %v727_v56 = vsel %vm259_vm1, %v367_v54, %v718_v53 }
 0x598   : > { %v721_v55 = vpop.permute.xlu1 %720 }
 0x599   : > { %v730_v57 = vsel %vm728_vm7, %v727_v56, %v721_v55 }
 0x5c4   : > { %v724_v58 = vpop.permute.xlu0 %723 }
 0x5c5   : > { %v733_v59 = vsel %vm731_vm8, %v730_v57, %v724_v58 }
 0x5c6   : > { %736 = vst.msk [vmem:[%s240_s12] sm:$0xf] %vm735_vm9, %v733_v59 }
 0x5c7 PF: > { %s14_s15 = sadd.s32 1, %s951_s15  }
 0x5c8   : > { %p11_p4 = scmp.ge.s32.totalorder %s14_s15, 4  }
 0x5ca   :  { %13 = sbr.rel (!%p11_p4) target bundleno = 1 (0x1), region = 75 }

</bundles_post_ra>
